<compile_context>
chip_gen: v5e
topology: v5e:2x2
jax: 0.10.0
libtpu: 0.0.40
codegen_flags: <defaults>
</compile_context>

<pallas_src>
import functools

import jax
import jax.numpy as jnp
import numpy as np
from jax.experimental import pallas as pl
from jax.experimental.pallas import tpu as pltpu

# ---------------- static problem geometry (toy 16x16 analogue) ----------------
C_IN, C_OUT = 3, 4            # conv1: Conv2d(3, 4, kernel_size=5, padding=2)
KSZ, PAD = 5, 2
H = W = 16                    # toy spatial size (module assumes 800x600)
H2, W2 = H // 2, W // 2       # pooled spatial size (8, 8)
HH, HW = (H + 2 * PAD) // 2, (W + 2 * PAD) // 2   # half-res padded grid (10,10)
NSH = (KSZ + 1) // 2          # 3 distinct row/col shifts per pooling phase
NPH = 4                       # 2x2 phase decomposition of the stride-2 pool
NSLAB = NPH * NSH * NSH       # 36 distinct (phase image, shift) slabs
BIAS_COL = NSLAB * 8          # 288: im2col row carrying the folded conv bias
R_ROWS = BIAS_COL + 16        # 304 rows of the in-VMEM im2col matrix
SPAD = 128                    # per-sample / per-channel padded spatial lanes
FEAT_W = C_OUT * SPAD         # 512 flattened-feature lanes fed to fc1
OUT_PAD = 128                 # lane-padded fc3 output width
N_CLS = 5

assert HH * HW <= SPAD and (NSH - 1) * (HW + 1) < SPAD


# ---------------- fused Pallas kernel ----------------

def convnet_kernel(xph_ref, wc_ref, w1_ref, b1_ref, w2_ref, b2_ref,
                   w3_ref, b3_ref, o_ref, r_ref, feats_ref, *, n_batch):
    """conv1(+bias)+ReLU+2x2 maxpool+flatten+fc1/ReLU/fc2/ReLU/fc3, fused.

    xph_ref : (32, N*SPAD + SPAD) f32 space-to-depth phase split of the
              zero-padded image; row = phase*8 + channel, lane =
              n*SPAD + u*HW + v on the 10x10 half-resolution grid.
    wc_ref  : (32, R_ROWS) bf16 conv1 weight scattered per pool phase,
              bias folded in at column BIAS_COL (prep-time constant).
    w1..w3  : bf16 MLP weights (in, out); w1 re-indexed to the padded pooled
              layout, w3/b3 lane-padded to OUT_PAD.
    o_ref   : (8, OUT_PAD) f32; caller slices [:n_batch, :N_CLS].
    r_ref   : (R_ROWS, N*SPAD) bf16 scratch -- in-VMEM phase-im2col matrix.
    feats_ref : (8, FEAT_W) bf16 scratch -- flattened pooled features.
    """
    L = r_ref.shape[1]                                     # N * SPAD
    bf = r_ref.dtype

    # -- 1. build the phase-im2col matrix in VMEM from shifted slices --------
    for ph in range(NPH):                                  # input phase (ah,aw)
        base = xph_ref[ph * 8:(ph + 1) * 8, :]             # (8, L + SPAD) f32
        for rh in range(NSH):
            for rw in range(NSH):
                idx = ph * NSH * NSH + rh * NSH + rw
                sh = rh * HW + rw                          # static lane shift
                r_ref[idx * 8:(idx + 1) * 8, :] = base[:, sh:sh + L].astype(bf)
    # folded conv bias: one all-ones row, rest of the block zero
    r_ref[BIAS_COL:BIAS_COL + 1, :] = jnp.ones((1, L), bf)
    r_ref[BIAS_COL + 1:R_ROWS, :] = jnp.zeros((R_ROWS - BIAS_COL - 1, L), bf)

    # -- 2. conv1 + bias as ONE MXU matmul; rows = pool_phase*8 + c_out ------
    z = jnp.dot(wc_ref[...], r_ref[...],
                preferred_element_type=jnp.float32)        # (32, L) f32

    # -- 3. 2x2 max-pool (max over the 4 phase row blocks) + ReLU ------------
    pooled = jnp.maximum(
        jnp.maximum(jnp.maximum(z[0:8], z[8:16]),
                    jnp.maximum(z[16:24], z[24:32])), 0.0)  # (8, L) f32

    # -- 4. NCHW flatten: full-128-lane, lane-aligned single-row copies ------
    feats_ref[...] = jnp.zeros_like(feats_ref)
    for n in range(n_batch):
        for c in range(C_OUT):
            feats_ref[n:n + 1, c * SPAD:(c + 1) * SPAD] = (
                pooled[c:c + 1, n * SPAD:(n + 1) * SPAD].astype(bf))

    # -- 5. MLP: fc1 -> ReLU -> fc2 -> ReLU -> fc3 (bf16 MXU, f32 accum) -----
    h = jnp.dot(feats_ref[...], w1_ref[...],
                preferred_element_type=jnp.float32) + b1_ref[...]
    h = jnp.maximum(h, 0.0).astype(bf)
    h = jnp.dot(h, w2_ref[...],
                preferred_element_type=jnp.float32) + b2_ref[...]
    h = jnp.maximum(h, 0.0).astype(bf)
    o_ref[...] = jnp.dot(h, w3_ref[...],
                         preferred_element_type=jnp.float32) + b3_ref[...]


# ---------------- one-time parameter preparation (hoisted out of forward) ----

def prepare_params(p):
    """One-time repack of the PyTorch-layout parameters into kernel layouts.

    Hoisted out of the per-call path (perf review): phase-scattered conv1
    weight with the bias folded in, fc1 weight re-indexed to the kernel's
    padded pooled layout, fc2/fc3 transposes, fc3/b3 lane padding and all
    bf16 casts.  Cache the result and reuse it for every forward call.
    """
    conv_w = np.asarray(p["conv1_w"], np.float32)          # (4, 3, 5, 5)
    conv_b = np.asarray(p["conv1_b"], np.float32)          # (4,)
    wconv = np.zeros((4 * 8, R_ROWS), np.float32)
    for pp in range(2):                                    # pool-phase rows
        for qq in range(2):
            rblk = (pp * 2 + qq) * 8
            wconv[rblk:rblk + C_OUT, BIAS_COL] = conv_b
            for kh in range(KSZ):
                ah, rh = (pp + kh) % 2, (pp + kh) // 2
                for kw in range(KSZ):
                    aw, rw = (qq + kw) % 2, (qq + kw) // 2
                    idx = (ah * 2 + aw) * NSH * NSH + rh * NSH + rw
                    wconv[rblk:rblk + C_OUT,
                          idx * 8:idx * 8 + C_IN] = conv_w[:, :, kh, kw]

    fc1_w = np.asarray(p["fc1_w"], np.float32)             # (256, C_OUT*H2*W2)
    w1p = np.zeros((FEAT_W, fc1_w.shape[0]), np.float32)
    for c in range(C_OUT):
        for i2 in range(H2):
            src = fc1_w[:, c * H2 * W2 + i2 * W2:
                        c * H2 * W2 + i2 * W2 + W2]        # (256, W2)
            w1p[c * SPAD + i2 * HW:c * SPAD + i2 * HW + W2, :] = src.T

    fc3_w = np.asarray(p["fc3_w"], np.float32)             # (N_CLS, 128)
    w3p = np.zeros((fc3_w.shape[1], OUT_PAD), np.float32)
    w3p[:, :N_CLS] = fc3_w.T
    b3p = np.zeros((1, OUT_PAD), np.float32)
    b3p[0, :N_CLS] = np.asarray(p["fc3_b"], np.float32)

    bf = jnp.bfloat16
    return {
        "wconv": jnp.asarray(wconv, dtype=bf),
        "w1": jnp.asarray(w1p, dtype=bf),
        "b1": jnp.asarray(p["fc1_b"], dtype=jnp.float32).reshape(1, -1),
        "w2": jnp.asarray(np.asarray(p["fc2_w"], np.float32).T, dtype=bf),
        "b2": jnp.asarray(p["fc2_b"], dtype=jnp.float32).reshape(1, -1),
        "w3": jnp.asarray(w3p, dtype=bf),
        "b3": jnp.asarray(b3p, dtype=jnp.float32),
    }


# ---------------- JAX wrapper ----------------

def convnet_forward(x, kp):
    """Forward pass.  `kp` is the output of prepare_params (cached, reused)."""
    N = x.shape[0]
    L = N * SPAD
    n_pad = max(8, ((N + 7) // 8) * 8)       # sublane-padded batch for the MLP

    # Per-call input prep: space-to-depth phase split of the padded image.
    # Pure layout ops on ~1x the image bytes (the 25x patch inflation now
    # happens inside the kernel, in VMEM only).
    xpad = jnp.pad(x, ((0, 0), (0, 0), (PAD, PAD), (PAD, PAD)))
    xps = xpad.reshape(N, C_IN, HH, 2, HW, 2)              # n,ci,u,ah,v,aw
    xps = xps.transpose(3, 5, 1, 0, 2, 4)                  # ah,aw,ci,n,u,v
    xps = xps.reshape(NPH, C_IN, N, HH * HW)
    xps = jnp.pad(xps, ((0, 0), (0, 8 - C_IN), (0, 0), (0, SPAD - HH * HW)))
    xph = xps.reshape(NPH * 8, L)
    xph = jnp.pad(xph, ((0, 0), (0, SPAD)))                # slack for the shifts

    vmem = pltpu.MemorySpace.VMEM
    out_full = pl.pallas_call(
        functools.partial(convnet_kernel, n_batch=N),
        out_shape=jax.ShapeDtypeStruct((n_pad, OUT_PAD), jnp.float32),
        in_specs=[pl.BlockSpec(memory_space=vmem) for _ in range(8)],
        out_specs=pl.BlockSpec(memory_space=vmem),
        scratch_shapes=[pltpu.VMEM((R_ROWS, L), jnp.bfloat16),
                        pltpu.VMEM((n_pad, FEAT_W), jnp.bfloat16)],
    )(xph, kp["wconv"], kp["w1"], kp["b1"], kp["w2"], kp["b2"],
      kp["w3"], kp["b3"])
    return out_full[:N, :N_CLS]


# ---------------- deterministic parameter init ----------------

def init_params(key):
    """Deterministic parameters matching the PyTorch module (toy 16x16 size).

    conv2 (= nn.Conv2d(4, 8, 3, padding=1)) is declared in __init__ but never
    used in forward(), so it is omitted.  fc1's in_features follows the toy
    spatial size: 4*8*8 = 256 (the module's 480000 assumes 800x600 inputs).
    """
    feat = C_OUT * H2 * W2
    ks = jax.random.split(key, 8)

    def u(k, shape, fan_in):
        lim = 1.0 / np.sqrt(fan_in)
        return jax.random.uniform(k, shape, jnp.float32, -lim, lim)

    return {
        "conv1_w": u(ks[0], (C_OUT, C_IN, KSZ, KSZ), C_IN * KSZ * KSZ),
        "conv1_b": u(ks[1], (C_OUT,), C_IN * KSZ * KSZ),
        "fc1_w": u(ks[2], (256, feat), feat),
        "fc1_b": u(ks[3], (256,), feat),
        "fc2_w": u(ks[4], (128, 256), 256),
        "fc2_b": u(ks[5], (128,), 256),
        "fc3_w": u(ks[6], (N_CLS, 128), 128),
        "fc3_b": u(ks[7], (N_CLS,), 128),
    }


# ---------------- pure-JAX f32 reference (for verification) ----------------

def ref_forward(x, p):
    y = jax.lax.conv_general_dilated(
        x, p["conv1_w"], window_strides=(1, 1),
        padding=((PAD, PAD), (PAD, PAD)),
        dimension_numbers=("NCHW", "OIHW", "NCHW"))
    y = jnp.maximum(y + p["conv1_b"][None, :, None, None], 0.0)
    y = jax.lax.reduce_window(y, -jnp.inf, jax.lax.max,
                              (1, 1, 2, 2), (1, 1, 2, 2), "VALID")
    f = y.reshape(x.shape[0], -1)
    h = jnp.maximum(f @ p["fc1_w"].T + p["fc1_b"], 0.0)
    h = jnp.maximum(h @ p["fc2_w"].T + p["fc2_b"], 0.0)
    return h @ p["fc3_w"].T + p["fc3_b"]


if __name__ == "__main__":
    key = jax.random.PRNGKey(0)
    kx, kparam = jax.random.split(key)
    N = 2
    x = jax.random.normal(kx, (N, C_IN, H, W), jnp.float32)

    params = init_params(kparam)
    kernel_params = prepare_params(params)     # one-time, cached with params

    fwd = jax.jit(convnet_forward)
    out = jax.block_until_ready(fwd(x, kernel_params))
    ref = jax.block_until_ready(ref_forward(x, params))

    assert out.shape == (N, N_CLS), out.shape
    # bf16 MXU operands vs. f32 reference -> relaxed (but still tight) tolerance.
    np.testing.assert_allclose(np.asarray(out), np.asarray(ref),
                               rtol=2e-2, atol=2e-2)
    print("KERNEL_OK")
</pallas_src>

<mosaic_0001>
module attributes {stable_mosaic.version = 11 : i64} {
  func.func @convnet_kernel(%arg0: memref<32x384xf32, #tpu.memory_space<vmem>>, %arg1: memref<32x304xbf16, #tpu.memory_space<vmem>>, %arg2: memref<512x256xbf16, #tpu.memory_space<vmem>>, %arg3: memref<1x256xf32, #tpu.memory_space<vmem>>, %arg4: memref<256x128xbf16, #tpu.memory_space<vmem>>, %arg5: memref<1x128xf32, #tpu.memory_space<vmem>>, %arg6: memref<128x128xbf16, #tpu.memory_space<vmem>>, %arg7: memref<1x128xf32, #tpu.memory_space<vmem>>, %arg8: memref<8x128xf32, #tpu.memory_space<vmem>>, %arg9: memref<304x256xbf16, #tpu.memory_space<vmem>>, %arg10: memref<8x512xbf16, #tpu.memory_space<vmem>>) attributes {dimension_semantics = [], scalar_prefetch = 0 : i64, scratch_operands = 2 : i64, tpu.core_type = #tpu.core_type<tc>} {
    %c0 = arith.constant 0 : index
    %c0_0 = arith.constant 0 : index
    %0 = vector.load %arg0[%c0, %c0_0] : memref<32x384xf32, #tpu.memory_space<vmem>>, vector<8x384xf32>
    %1 = vector.extract_strided_slice %0 {offsets = [0, 0], sizes = [8, 256], strides = [1, 1]} : vector<8x384xf32> to vector<8x256xf32>
    %2 = arith.truncf %1 : vector<8x256xf32> to vector<8x256xbf16>
    %c0_1 = arith.constant 0 : index
    %c0_2 = arith.constant 0 : index
    %3 = vector.load %arg9[%c0_1, %c0_2] : memref<304x256xbf16, #tpu.memory_space<vmem>>, vector<8x256xbf16>
    tpu.vector_store %arg9[%c0_1, %c0_2], %2 {strides = array<i32>} : memref<304x256xbf16, #tpu.memory_space<vmem>>, vector<8x256xbf16>,
    %4 = vector.extract_strided_slice %0 {offsets = [0, 1], sizes = [8, 256], strides = [1, 1]} : vector<8x384xf32> to vector<8x256xf32>
    %5 = arith.truncf %4 : vector<8x256xf32> to vector<8x256xbf16>
    %c8 = arith.constant 8 : index
    %c0_3 = arith.constant 0 : index
    %6 = vector.load %arg9[%c8, %c0_3] : memref<304x256xbf16, #tpu.memory_space<vmem>>, vector<8x256xbf16>
    tpu.vector_store %arg9[%c8, %c0_3], %5 {strides = array<i32>} : memref<304x256xbf16, #tpu.memory_space<vmem>>, vector<8x256xbf16>,
    %7 = vector.extract_strided_slice %0 {offsets = [0, 2], sizes = [8, 256], strides = [1, 1]} : vector<8x384xf32> to vector<8x256xf32>
    %8 = arith.truncf %7 : vector<8x256xf32> to vector<8x256xbf16>
    %c16 = arith.constant 16 : index
    %c0_4 = arith.constant 0 : index
    %9 = vector.load %arg9[%c16, %c0_4] : memref<304x256xbf16, #tpu.memory_space<vmem>>, vector<8x256xbf16>
    tpu.vector_store %arg9[%c16, %c0_4], %8 {strides = array<i32>} : memref<304x256xbf16, #tpu.memory_space<vmem>>, vector<8x256xbf16>,
    %10 = vector.extract_strided_slice %0 {offsets = [0, 10], sizes = [8, 256], strides = [1, 1]} : vector<8x384xf32> to vector<8x256xf32>
    %11 = arith.truncf %10 : vector<8x256xf32> to vector<8x256xbf16>
    %c24 = arith.constant 24 : index
    %c0_5 = arith.constant 0 : index
    %12 = vector.load %arg9[%c24, %c0_5] : memref<304x256xbf16, #tpu.memory_space<vmem>>, vector<8x256xbf16>
    tpu.vector_store %arg9[%c24, %c0_5], %11 {strides = array<i32>} : memref<304x256xbf16, #tpu.memory_space<vmem>>, vector<8x256xbf16>,
    %13 = vector.extract_strided_slice %0 {offsets = [0, 11], sizes = [8, 256], strides = [1, 1]} : vector<8x384xf32> to vector<8x256xf32>
    %14 = arith.truncf %13 : vector<8x256xf32> to vector<8x256xbf16>
    %c32 = arith.constant 32 : index
    %c0_6 = arith.constant 0 : index
    %15 = vector.load %arg9[%c32, %c0_6] : memref<304x256xbf16, #tpu.memory_space<vmem>>, vector<8x256xbf16>
    tpu.vector_store %arg9[%c32, %c0_6], %14 {strides = array<i32>} : memref<304x256xbf16, #tpu.memory_space<vmem>>, vector<8x256xbf16>,
    %16 = vector.extract_strided_slice %0 {offsets = [0, 12], sizes = [8, 256], strides = [1, 1]} : vector<8x384xf32> to vector<8x256xf32>
    %17 = arith.truncf %16 : vector<8x256xf32> to vector<8x256xbf16>
    %c40 = arith.constant 40 : index
    %c0_7 = arith.constant 0 : index
    %18 = vector.load %arg9[%c40, %c0_7] : memref<304x256xbf16, #tpu.memory_space<vmem>>, vector<8x256xbf16>
    tpu.vector_store %arg9[%c40, %c0_7], %17 {strides = array<i32>} : memref<304x256xbf16, #tpu.memory_space<vmem>>, vector<8x256xbf16>,
    %19 = vector.extract_strided_slice %0 {offsets = [0, 20], sizes = [8, 256], strides = [1, 1]} : vector<8x384xf32> to vector<8x256xf32>
    %20 = arith.truncf %19 : vector<8x256xf32> to vector<8x256xbf16>
    %c48 = arith.constant 48 : index
    %c0_8 = arith.constant 0 : index
    %21 = vector.load %arg9[%c48, %c0_8] : memref<304x256xbf16, #tpu.memory_space<vmem>>, vector<8x256xbf16>
    tpu.vector_store %arg9[%c48, %c0_8], %20 {strides = array<i32>} : memref<304x256xbf16, #tpu.memory_space<vmem>>, vector<8x256xbf16>,
    %22 = vector.extract_strided_slice %0 {offsets = [0, 21], sizes = [8, 256], strides = [1, 1]} : vector<8x384xf32> to vector<8x256xf32>
    %23 = arith.truncf %22 : vector<8x256xf32> to vector<8x256xbf16>
    %c56 = arith.constant 56 : index
    %c0_9 = arith.constant 0 : index
    %24 = vector.load %arg9[%c56, %c0_9] : memref<304x256xbf16, #tpu.memory_space<vmem>>, vector<8x256xbf16>
    tpu.vector_store %arg9[%c56, %c0_9], %23 {strides = array<i32>} : memref<304x256xbf16, #tpu.memory_space<vmem>>, vector<8x256xbf16>,
    %25 = vector.extract_strided_slice %0 {offsets = [0, 22], sizes = [8, 256], strides = [1, 1]} : vector<8x384xf32> to vector<8x256xf32>
    %26 = arith.truncf %25 : vector<8x256xf32> to vector<8x256xbf16>
    %c64 = arith.constant 64 : index
    %c0_10 = arith.constant 0 : index
    %27 = vector.load %arg9[%c64, %c0_10] : memref<304x256xbf16, #tpu.memory_space<vmem>>, vector<8x256xbf16>
    tpu.vector_store %arg9[%c64, %c0_10], %26 {strides = array<i32>} : memref<304x256xbf16, #tpu.memory_space<vmem>>, vector<8x256xbf16>,
    %c8_11 = arith.constant 8 : index
    %c0_12 = arith.constant 0 : index
    %28 = vector.load %arg0[%c8_11, %c0_12] : memref<32x384xf32, #tpu.memory_space<vmem>>, vector<8x384xf32>
    %29 = vector.extract_strided_slice %28 {offsets = [0, 0], sizes = [8, 256], strides = [1, 1]} : vector<8x384xf32> to vector<8x256xf32>
    %30 = arith.truncf %29 : vector<8x256xf32> to vector<8x256xbf16>
    %c72 = arith.constant 72 : index
    %c0_13 = arith.constant 0 : index
    %31 = vector.load %arg9[%c72, %c0_13] : memref<304x256xbf16, #tpu.memory_space<vmem>>, vector<8x256xbf16>
    tpu.vector_store %arg9[%c72, %c0_13], %30 {strides = array<i32>} : memref<304x256xbf16, #tpu.memory_space<vmem>>, vector<8x256xbf16>,
    %32 = vector.extract_strided_slice %28 {offsets = [0, 1], sizes = [8, 256], strides = [1, 1]} : vector<8x384xf32> to vector<8x256xf32>
    %33 = arith.truncf %32 : vector<8x256xf32> to vector<8x256xbf16>
    %c80 = arith.constant 80 : index
    %c0_14 = arith.constant 0 : index
    %34 = vector.load %arg9[%c80, %c0_14] : memref<304x256xbf16, #tpu.memory_space<vmem>>, vector<8x256xbf16>
    tpu.vector_store %arg9[%c80, %c0_14], %33 {strides = array<i32>} : memref<304x256xbf16, #tpu.memory_space<vmem>>, vector<8x256xbf16>,
    %35 = vector.extract_strided_slice %28 {offsets = [0, 2], sizes = [8, 256], strides = [1, 1]} : vector<8x384xf32> to vector<8x256xf32>
    %36 = arith.truncf %35 : vector<8x256xf32> to vector<8x256xbf16>
    %c88 = arith.constant 88 : index
    %c0_15 = arith.constant 0 : index
    %37 = vector.load %arg9[%c88, %c0_15] : memref<304x256xbf16, #tpu.memory_space<vmem>>, vector<8x256xbf16>
    tpu.vector_store %arg9[%c88, %c0_15], %36 {strides = array<i32>} : memref<304x256xbf16, #tpu.memory_space<vmem>>, vector<8x256xbf16>,
    %38 = vector.extract_strided_slice %28 {offsets = [0, 10], sizes = [8, 256], strides = [1, 1]} : vector<8x384xf32> to vector<8x256xf32>
    %39 = arith.truncf %38 : vector<8x256xf32> to vector<8x256xbf16>
    %c96 = arith.constant 96 : index
    %c0_16 = arith.constant 0 : index
    %40 = vector.load %arg9[%c96, %c0_16] : memref<304x256xbf16, #tpu.memory_space<vmem>>, vector<8x256xbf16>
    tpu.vector_store %arg9[%c96, %c0_16], %39 {strides = array<i32>} : memref<304x256xbf16, #tpu.memory_space<vmem>>, vector<8x256xbf16>,
    %41 = vector.extract_strided_slice %28 {offsets = [0, 11], sizes = [8, 256], strides = [1, 1]} : vector<8x384xf32> to vector<8x256xf32>
    %42 = arith.truncf %41 : vector<8x256xf32> to vector<8x256xbf16>
    %c104 = arith.constant 104 : index
    %c0_17 = arith.constant 0 : index
    %43 = vector.load %arg9[%c104, %c0_17] : memref<304x256xbf16, #tpu.memory_space<vmem>>, vector<8x256xbf16>
    tpu.vector_store %arg9[%c104, %c0_17], %42 {strides = array<i32>} : memref<304x256xbf16, #tpu.memory_space<vmem>>, vector<8x256xbf16>,
    %44 = vector.extract_strided_slice %28 {offsets = [0, 12], sizes = [8, 256], strides = [1, 1]} : vector<8x384xf32> to vector<8x256xf32>
    %45 = arith.truncf %44 : vector<8x256xf32> to vector<8x256xbf16>
    %c112 = arith.constant 112 : index
    %c0_18 = arith.constant 0 : index
    %46 = vector.load %arg9[%c112, %c0_18] : memref<304x256xbf16, #tpu.memory_space<vmem>>, vector<8x256xbf16>
    tpu.vector_store %arg9[%c112, %c0_18], %45 {strides = array<i32>} : memref<304x256xbf16, #tpu.memory_space<vmem>>, vector<8x256xbf16>,
    %47 = vector.extract_strided_slice %28 {offsets = [0, 20], sizes = [8, 256], strides = [1, 1]} : vector<8x384xf32> to vector<8x256xf32>
    %48 = arith.truncf %47 : vector<8x256xf32> to vector<8x256xbf16>
    %c120 = arith.constant 120 : index
    %c0_19 = arith.constant 0 : index
    %49 = vector.load %arg9[%c120, %c0_19] : memref<304x256xbf16, #tpu.memory_space<vmem>>, vector<8x256xbf16>
    tpu.vector_store %arg9[%c120, %c0_19], %48 {strides = array<i32>} : memref<304x256xbf16, #tpu.memory_space<vmem>>, vector<8x256xbf16>,
    %50 = vector.extract_strided_slice %28 {offsets = [0, 21], sizes = [8, 256], strides = [1, 1]} : vector<8x384xf32> to vector<8x256xf32>
    %51 = arith.truncf %50 : vector<8x256xf32> to vector<8x256xbf16>
    %c128 = arith.constant 128 : index
    %c0_20 = arith.constant 0 : index
    %52 = vector.load %arg9[%c128, %c0_20] : memref<304x256xbf16, #tpu.memory_space<vmem>>, vector<8x256xbf16>
    tpu.vector_store %arg9[%c128, %c0_20], %51 {strides = array<i32>} : memref<304x256xbf16, #tpu.memory_space<vmem>>, vector<8x256xbf16>,
    %53 = vector.extract_strided_slice %28 {offsets = [0, 22], sizes = [8, 256], strides = [1, 1]} : vector<8x384xf32> to vector<8x256xf32>
    %54 = arith.truncf %53 : vector<8x256xf32> to vector<8x256xbf16>
    %c136 = arith.constant 136 : index
    %c0_21 = arith.constant 0 : index
    %55 = vector.load %arg9[%c136, %c0_21] : memref<304x256xbf16, #tpu.memory_space<vmem>>, vector<8x256xbf16>
    tpu.vector_store %arg9[%c136, %c0_21], %54 {strides = array<i32>} : memref<304x256xbf16, #tpu.memory_space<vmem>>, vector<8x256xbf16>,
    %c16_22 = arith.constant 16 : index
    %c0_23 = arith.constant 0 : index
    %56 = vector.load %arg0[%c16_22, %c0_23] : memref<32x384xf32, #tpu.memory_space<vmem>>, vector<8x384xf32>
    %57 = vector.extract_strided_slice %56 {offsets = [0, 0], sizes = [8, 256], strides = [1, 1]} : vector<8x384xf32> to vector<8x256xf32>
    %58 = arith.truncf %57 : vector<8x256xf32> to vector<8x256xbf16>
    %c144 = arith.constant 144 : index
    %c0_24 = arith.constant 0 : index
    %59 = vector.load %arg9[%c144, %c0_24] : memref<304x256xbf16, #tpu.memory_space<vmem>>, vector<8x256xbf16>
    tpu.vector_store %arg9[%c144, %c0_24], %58 {strides = array<i32>} : memref<304x256xbf16, #tpu.memory_space<vmem>>, vector<8x256xbf16>,
    %60 = vector.extract_strided_slice %56 {offsets = [0, 1], sizes = [8, 256], strides = [1, 1]} : vector<8x384xf32> to vector<8x256xf32>
    %61 = arith.truncf %60 : vector<8x256xf32> to vector<8x256xbf16>
    %c152 = arith.constant 152 : index
    %c0_25 = arith.constant 0 : index
    %62 = vector.load %arg9[%c152, %c0_25] : memref<304x256xbf16, #tpu.memory_space<vmem>>, vector<8x256xbf16>
    tpu.vector_store %arg9[%c152, %c0_25], %61 {strides = array<i32>} : memref<304x256xbf16, #tpu.memory_space<vmem>>, vector<8x256xbf16>,
    %63 = vector.extract_strided_slice %56 {offsets = [0, 2], sizes = [8, 256], strides = [1, 1]} : vector<8x384xf32> to vector<8x256xf32>
    %64 = arith.truncf %63 : vector<8x256xf32> to vector<8x256xbf16>
    %c160 = arith.constant 160 : index
    %c0_26 = arith.constant 0 : index
    %65 = vector.load %arg9[%c160, %c0_26] : memref<304x256xbf16, #tpu.memory_space<vmem>>, vector<8x256xbf16>
    tpu.vector_store %arg9[%c160, %c0_26], %64 {strides = array<i32>} : memref<304x256xbf16, #tpu.memory_space<vmem>>, vector<8x256xbf16>,
    %66 = vector.extract_strided_slice %56 {offsets = [0, 10], sizes = [8, 256], strides = [1, 1]} : vector<8x384xf32> to vector<8x256xf32>
    %67 = arith.truncf %66 : vector<8x256xf32> to vector<8x256xbf16>
    %c168 = arith.constant 168 : index
    %c0_27 = arith.constant 0 : index
    %68 = vector.load %arg9[%c168, %c0_27] : memref<304x256xbf16, #tpu.memory_space<vmem>>, vector<8x256xbf16>
    tpu.vector_store %arg9[%c168, %c0_27], %67 {strides = array<i32>} : memref<304x256xbf16, #tpu.memory_space<vmem>>, vector<8x256xbf16>,
    %69 = vector.extract_strided_slice %56 {offsets = [0, 11], sizes = [8, 256], strides = [1, 1]} : vector<8x384xf32> to vector<8x256xf32>
    %70 = arith.truncf %69 : vector<8x256xf32> to vector<8x256xbf16>
    %c176 = arith.constant 176 : index
    %c0_28 = arith.constant 0 : index
    %71 = vector.load %arg9[%c176, %c0_28] : memref<304x256xbf16, #tpu.memory_space<vmem>>, vector<8x256xbf16>
    tpu.vector_store %arg9[%c176, %c0_28], %70 {strides = array<i32>} : memref<304x256xbf16, #tpu.memory_space<vmem>>, vector<8x256xbf16>,
    %72 = vector.extract_strided_slice %56 {offsets = [0, 12], sizes = [8, 256], strides = [1, 1]} : vector<8x384xf32> to vector<8x256xf32>
    %73 = arith.truncf %72 : vector<8x256xf32> to vector<8x256xbf16>
    %c184 = arith.constant 184 : index
    %c0_29 = arith.constant 0 : index
    %74 = vector.load %arg9[%c184, %c0_29] : memref<304x256xbf16, #tpu.memory_space<vmem>>, vector<8x256xbf16>
    tpu.vector_store %arg9[%c184, %c0_29], %73 {strides = array<i32>} : memref<304x256xbf16, #tpu.memory_space<vmem>>, vector<8x256xbf16>,
    %75 = vector.extract_strided_slice %56 {offsets = [0, 20], sizes = [8, 256], strides = [1, 1]} : vector<8x384xf32> to vector<8x256xf32>
    %76 = arith.truncf %75 : vector<8x256xf32> to vector<8x256xbf16>
    %c192 = arith.constant 192 : index
    %c0_30 = arith.constant 0 : index
    %77 = vector.load %arg9[%c192, %c0_30] : memref<304x256xbf16, #tpu.memory_space<vmem>>, vector<8x256xbf16>
    tpu.vector_store %arg9[%c192, %c0_30], %76 {strides = array<i32>} : memref<304x256xbf16, #tpu.memory_space<vmem>>, vector<8x256xbf16>,
    %78 = vector.extract_strided_slice %56 {offsets = [0, 21], sizes = [8, 256], strides = [1, 1]} : vector<8x384xf32> to vector<8x256xf32>
    %79 = arith.truncf %78 : vector<8x256xf32> to vector<8x256xbf16>
    %c200 = arith.constant 200 : index
    %c0_31 = arith.constant 0 : index
    %80 = vector.load %arg9[%c200, %c0_31] : memref<304x256xbf16, #tpu.memory_space<vmem>>, vector<8x256xbf16>
    tpu.vector_store %arg9[%c200, %c0_31], %79 {strides = array<i32>} : memref<304x256xbf16, #tpu.memory_space<vmem>>, vector<8x256xbf16>,
    %81 = vector.extract_strided_slice %56 {offsets = [0, 22], sizes = [8, 256], strides = [1, 1]} : vector<8x384xf32> to vector<8x256xf32>
    %82 = arith.truncf %81 : vector<8x256xf32> to vector<8x256xbf16>
    %c208 = arith.constant 208 : index
    %c0_32 = arith.constant 0 : index
    %83 = vector.load %arg9[%c208, %c0_32] : memref<304x256xbf16, #tpu.memory_space<vmem>>, vector<8x256xbf16>
    tpu.vector_store %arg9[%c208, %c0_32], %82 {strides = array<i32>} : memref<304x256xbf16, #tpu.memory_space<vmem>>, vector<8x256xbf16>,
    %c24_33 = arith.constant 24 : index
    %c0_34 = arith.constant 0 : index
    %84 = vector.load %arg0[%c24_33, %c0_34] : memref<32x384xf32, #tpu.memory_space<vmem>>, vector<8x384xf32>
    %85 = vector.extract_strided_slice %84 {offsets = [0, 0], sizes = [8, 256], strides = [1, 1]} : vector<8x384xf32> to vector<8x256xf32>
    %86 = arith.truncf %85 : vector<8x256xf32> to vector<8x256xbf16>
    %c216 = arith.constant 216 : index
    %c0_35 = arith.constant 0 : index
    %87 = vector.load %arg9[%c216, %c0_35] : memref<304x256xbf16, #tpu.memory_space<vmem>>, vector<8x256xbf16>
    tpu.vector_store %arg9[%c216, %c0_35], %86 {strides = array<i32>} : memref<304x256xbf16, #tpu.memory_space<vmem>>, vector<8x256xbf16>,
    %88 = vector.extract_strided_slice %84 {offsets = [0, 1], sizes = [8, 256], strides = [1, 1]} : vector<8x384xf32> to vector<8x256xf32>
    %89 = arith.truncf %88 : vector<8x256xf32> to vector<8x256xbf16>
    %c224 = arith.constant 224 : index
    %c0_36 = arith.constant 0 : index
    %90 = vector.load %arg9[%c224, %c0_36] : memref<304x256xbf16, #tpu.memory_space<vmem>>, vector<8x256xbf16>
    tpu.vector_store %arg9[%c224, %c0_36], %89 {strides = array<i32>} : memref<304x256xbf16, #tpu.memory_space<vmem>>, vector<8x256xbf16>,
    %91 = vector.extract_strided_slice %84 {offsets = [0, 2], sizes = [8, 256], strides = [1, 1]} : vector<8x384xf32> to vector<8x256xf32>
    %92 = arith.truncf %91 : vector<8x256xf32> to vector<8x256xbf16>
    %c232 = arith.constant 232 : index
    %c0_37 = arith.constant 0 : index
    %93 = vector.load %arg9[%c232, %c0_37] : memref<304x256xbf16, #tpu.memory_space<vmem>>, vector<8x256xbf16>
    tpu.vector_store %arg9[%c232, %c0_37], %92 {strides = array<i32>} : memref<304x256xbf16, #tpu.memory_space<vmem>>, vector<8x256xbf16>,
    %94 = vector.extract_strided_slice %84 {offsets = [0, 10], sizes = [8, 256], strides = [1, 1]} : vector<8x384xf32> to vector<8x256xf32>
    %95 = arith.truncf %94 : vector<8x256xf32> to vector<8x256xbf16>
    %c240 = arith.constant 240 : index
    %c0_38 = arith.constant 0 : index
    %96 = vector.load %arg9[%c240, %c0_38] : memref<304x256xbf16, #tpu.memory_space<vmem>>, vector<8x256xbf16>
    tpu.vector_store %arg9[%c240, %c0_38], %95 {strides = array<i32>} : memref<304x256xbf16, #tpu.memory_space<vmem>>, vector<8x256xbf16>,
    %97 = vector.extract_strided_slice %84 {offsets = [0, 11], sizes = [8, 256], strides = [1, 1]} : vector<8x384xf32> to vector<8x256xf32>
    %98 = arith.truncf %97 : vector<8x256xf32> to vector<8x256xbf16>
    %c248 = arith.constant 248 : index
    %c0_39 = arith.constant 0 : index
    %99 = vector.load %arg9[%c248, %c0_39] : memref<304x256xbf16, #tpu.memory_space<vmem>>, vector<8x256xbf16>
    tpu.vector_store %arg9[%c248, %c0_39], %98 {strides = array<i32>} : memref<304x256xbf16, #tpu.memory_space<vmem>>, vector<8x256xbf16>,
    %100 = vector.extract_strided_slice %84 {offsets = [0, 12], sizes = [8, 256], strides = [1, 1]} : vector<8x384xf32> to vector<8x256xf32>
    %101 = arith.truncf %100 : vector<8x256xf32> to vector<8x256xbf16>
    %c256 = arith.constant 256 : index
    %c0_40 = arith.constant 0 : index
    %102 = vector.load %arg9[%c256, %c0_40] : memref<304x256xbf16, #tpu.memory_space<vmem>>, vector<8x256xbf16>
    tpu.vector_store %arg9[%c256, %c0_40], %101 {strides = array<i32>} : memref<304x256xbf16, #tpu.memory_space<vmem>>, vector<8x256xbf16>,
    %103 = vector.extract_strided_slice %84 {offsets = [0, 20], sizes = [8, 256], strides = [1, 1]} : vector<8x384xf32> to vector<8x256xf32>
    %104 = arith.truncf %103 : vector<8x256xf32> to vector<8x256xbf16>
    %c264 = arith.constant 264 : index
    %c0_41 = arith.constant 0 : index
    %105 = vector.load %arg9[%c264, %c0_41] : memref<304x256xbf16, #tpu.memory_space<vmem>>, vector<8x256xbf16>
    tpu.vector_store %arg9[%c264, %c0_41], %104 {strides = array<i32>} : memref<304x256xbf16, #tpu.memory_space<vmem>>, vector<8x256xbf16>,
    %106 = vector.extract_strided_slice %84 {offsets = [0, 21], sizes = [8, 256], strides = [1, 1]} : vector<8x384xf32> to vector<8x256xf32>
    %107 = arith.truncf %106 : vector<8x256xf32> to vector<8x256xbf16>
    %c272 = arith.constant 272 : index
    %c0_42 = arith.constant 0 : index
    %108 = vector.load %arg9[%c272, %c0_42] : memref<304x256xbf16, #tpu.memory_space<vmem>>, vector<8x256xbf16>
    tpu.vector_store %arg9[%c272, %c0_42], %107 {strides = array<i32>} : memref<304x256xbf16, #tpu.memory_space<vmem>>, vector<8x256xbf16>,
    %109 = vector.extract_strided_slice %84 {offsets = [0, 22], sizes = [8, 256], strides = [1, 1]} : vector<8x384xf32> to vector<8x256xf32>
    %110 = arith.truncf %109 : vector<8x256xf32> to vector<8x256xbf16>
    %c280 = arith.constant 280 : index
    %c0_43 = arith.constant 0 : index
    %111 = vector.load %arg9[%c280, %c0_43] : memref<304x256xbf16, #tpu.memory_space<vmem>>, vector<8x256xbf16>
    tpu.vector_store %arg9[%c280, %c0_43], %110 {strides = array<i32>} : memref<304x256xbf16, #tpu.memory_space<vmem>>, vector<8x256xbf16>,
    %cst = arith.constant 1.000000e+00 : bf16
    %112 = vector.broadcast %cst : bf16 to vector<1x256xbf16>
    %c288 = arith.constant 288 : index
    %c0_44 = arith.constant 0 : index
    %113 = vector.load %arg9[%c288, %c0_44] : memref<304x256xbf16, #tpu.memory_space<vmem>>, vector<1x256xbf16>
    tpu.vector_store %arg9[%c288, %c0_44], %112 {strides = array<i32>} : memref<304x256xbf16, #tpu.memory_space<vmem>>, vector<1x256xbf16>,
    %cst_45 = arith.constant 0.000000e+00 : bf16
    %114 = vector.broadcast %cst_45 : bf16 to vector<15x256xbf16>
    %c289 = arith.constant 289 : index
    %c0_46 = arith.constant 0 : index
    %115 = vector.load %arg9[%c289, %c0_46] : memref<304x256xbf16, #tpu.memory_space<vmem>>, vector<15x256xbf16>
    tpu.vector_store %arg9[%c289, %c0_46], %114 {strides = array<i32>} : memref<304x256xbf16, #tpu.memory_space<vmem>>, vector<15x256xbf16>,
    %c0_47 = arith.constant 0 : index
    %c0_48 = arith.constant 0 : index
    %116 = vector.load %arg1[%c0_47, %c0_48] : memref<32x304xbf16, #tpu.memory_space<vmem>>, vector<32x304xbf16>
    %c0_49 = arith.constant 0 : index
    %c0_50 = arith.constant 0 : index
    %117 = vector.load %arg9[%c0_49, %c0_50] : memref<304x256xbf16, #tpu.memory_space<vmem>>, vector<304x256xbf16>
    %cst_51 = arith.constant dense<0.000000e+00> : vector<32x256xf32>
    %118 = tpu.matmul %116, %117, %cst_51 {dimension_numbers = #tpu.dot_dimension_numbers<[1], [0], [0], [1], [0, 0, 1, 1], [], []>} : vector<32x304xbf16>, vector<304x256xbf16>, vector<32x256xf32> -> vector<32x256xf32>
    %119 = vector.extract_strided_slice %118 {offsets = [0, 0], sizes = [8, 256], strides = [1, 1]} : vector<32x256xf32> to vector<8x256xf32>
    %120 = vector.extract_strided_slice %118 {offsets = [8, 0], sizes = [8, 256], strides = [1, 1]} : vector<32x256xf32> to vector<8x256xf32>
    %121 = arith.maximumf %119, %120 : vector<8x256xf32>
    %122 = vector.extract_strided_slice %118 {offsets = [16, 0], sizes = [8, 256], strides = [1, 1]} : vector<32x256xf32> to vector<8x256xf32>
    %123 = vector.extract_strided_slice %118 {offsets = [24, 0], sizes = [8, 256], strides = [1, 1]} : vector<32x256xf32> to vector<8x256xf32>
    %124 = arith.maximumf %122, %123 : vector<8x256xf32>
    %125 = arith.maximumf %121, %124 : vector<8x256xf32>
    %cst_52 = arith.constant 0.000000e+00 : f32
    %126 = vector.broadcast %cst_52 : f32 to vector<8x256xf32>
    %127 = arith.maximumf %125, %126 : vector<8x256xf32>
    %cst_53 = arith.constant 0.000000e+00 : bf16
    %128 = vector.broadcast %cst_53 : bf16 to vector<8x512xbf16>
    %c0_54 = arith.constant 0 : index
    %c0_55 = arith.constant 0 : index
    %129 = vector.load %arg10[%c0_54, %c0_55] : memref<8x512xbf16, #tpu.memory_space<vmem>>, vector<8x512xbf16>
    tpu.vector_store %arg10[%c0_54, %c0_55], %128 {strides = array<i32>} : memref<8x512xbf16, #tpu.memory_space<vmem>>, vector<8x512xbf16>,
    %130 = vector.extract_strided_slice %127 {offsets = [0, 0], sizes = [1, 128], strides = [1, 1]} : vector<8x256xf32> to vector<1x128xf32>
    %131 = arith.truncf %130 : vector<1x128xf32> to vector<1x128xbf16>
    %c0_56 = arith.constant 0 : index
    %c0_57 = arith.constant 0 : index
    %132 = vector.load %arg10[%c0_56, %c0_57] : memref<8x512xbf16, #tpu.memory_space<vmem>>, vector<1x128xbf16>
    tpu.vector_store %arg10[%c0_56, %c0_57], %131 {strides = array<i32>} : memref<8x512xbf16, #tpu.memory_space<vmem>>, vector<1x128xbf16>,
    %133 = vector.extract_strided_slice %127 {offsets = [1, 0], sizes = [1, 128], strides = [1, 1]} : vector<8x256xf32> to vector<1x128xf32>
    %134 = arith.truncf %133 : vector<1x128xf32> to vector<1x128xbf16>
    %c0_58 = arith.constant 0 : index
    %c128_59 = arith.constant 128 : index
    %135 = vector.load %arg10[%c0_58, %c128_59] : memref<8x512xbf16, #tpu.memory_space<vmem>>, vector<1x128xbf16>
    tpu.vector_store %arg10[%c0_58, %c128_59], %134 {strides = array<i32>} : memref<8x512xbf16, #tpu.memory_space<vmem>>, vector<1x128xbf16>,
    %136 = vector.extract_strided_slice %127 {offsets = [2, 0], sizes = [1, 128], strides = [1, 1]} : vector<8x256xf32> to vector<1x128xf32>
    %137 = arith.truncf %136 : vector<1x128xf32> to vector<1x128xbf16>
    %c0_60 = arith.constant 0 : index
    %c256_61 = arith.constant 256 : index
    %138 = vector.load %arg10[%c0_60, %c256_61] : memref<8x512xbf16, #tpu.memory_space<vmem>>, vector<1x128xbf16>
    tpu.vector_store %arg10[%c0_60, %c256_61], %137 {strides = array<i32>} : memref<8x512xbf16, #tpu.memory_space<vmem>>, vector<1x128xbf16>,
    %139 = vector.extract_strided_slice %127 {offsets = [3, 0], sizes = [1, 128], strides = [1, 1]} : vector<8x256xf32> to vector<1x128xf32>
    %140 = arith.truncf %139 : vector<1x128xf32> to vector<1x128xbf16>
    %c0_62 = arith.constant 0 : index
    %c384 = arith.constant 384 : index
    %141 = vector.load %arg10[%c0_62, %c384] : memref<8x512xbf16, #tpu.memory_space<vmem>>, vector<1x128xbf16>
    tpu.vector_store %arg10[%c0_62, %c384], %140 {strides = array<i32>} : memref<8x512xbf16, #tpu.memory_space<vmem>>, vector<1x128xbf16>,
    %142 = vector.extract_strided_slice %127 {offsets = [0, 128], sizes = [1, 128], strides = [1, 1]} : vector<8x256xf32> to vector<1x128xf32>
    %143 = arith.truncf %142 : vector<1x128xf32> to vector<1x128xbf16>
    %c1 = arith.constant 1 : index
    %c0_63 = arith.constant 0 : index
    %144 = vector.load %arg10[%c1, %c0_63] : memref<8x512xbf16, #tpu.memory_space<vmem>>, vector<1x128xbf16>
    tpu.vector_store %arg10[%c1, %c0_63], %143 {strides = array<i32>} : memref<8x512xbf16, #tpu.memory_space<vmem>>, vector<1x128xbf16>,
    %145 = vector.extract_strided_slice %127 {offsets = [1, 128], sizes = [1, 128], strides = [1, 1]} : vector<8x256xf32> to vector<1x128xf32>
    %146 = arith.truncf %145 : vector<1x128xf32> to vector<1x128xbf16>
    %c1_64 = arith.constant 1 : index
    %c128_65 = arith.constant 128 : index
    %147 = vector.load %arg10[%c1_64, %c128_65] : memref<8x512xbf16, #tpu.memory_space<vmem>>, vector<1x128xbf16>
    tpu.vector_store %arg10[%c1_64, %c128_65], %146 {strides = array<i32>} : memref<8x512xbf16, #tpu.memory_space<vmem>>, vector<1x128xbf16>,
    %148 = vector.extract_strided_slice %127 {offsets = [2, 128], sizes = [1, 128], strides = [1, 1]} : vector<8x256xf32> to vector<1x128xf32>
    %149 = arith.truncf %148 : vector<1x128xf32> to vector<1x128xbf16>
    %c1_66 = arith.constant 1 : index
    %c256_67 = arith.constant 256 : index
    %150 = vector.load %arg10[%c1_66, %c256_67] : memref<8x512xbf16, #tpu.memory_space<vmem>>, vector<1x128xbf16>
    tpu.vector_store %arg10[%c1_66, %c256_67], %149 {strides = array<i32>} : memref<8x512xbf16, #tpu.memory_space<vmem>>, vector<1x128xbf16>,
    %151 = vector.extract_strided_slice %127 {offsets = [3, 128], sizes = [1, 128], strides = [1, 1]} : vector<8x256xf32> to vector<1x128xf32>
    %152 = arith.truncf %151 : vector<1x128xf32> to vector<1x128xbf16>
    %c1_68 = arith.constant 1 : index
    %c384_69 = arith.constant 384 : index
    %153 = vector.load %arg10[%c1_68, %c384_69] : memref<8x512xbf16, #tpu.memory_space<vmem>>, vector<1x128xbf16>
    tpu.vector_store %arg10[%c1_68, %c384_69], %152 {strides = array<i32>} : memref<8x512xbf16, #tpu.memory_space<vmem>>, vector<1x128xbf16>,
    %c0_70 = arith.constant 0 : index
    %c0_71 = arith.constant 0 : index
    %154 = vector.load %arg10[%c0_70, %c0_71] : memref<8x512xbf16, #tpu.memory_space<vmem>>, vector<8x512xbf16>
    %c0_72 = arith.constant 0 : index
    %c0_73 = arith.constant 0 : index
    %155 = vector.load %arg2[%c0_72, %c0_73] : memref<512x256xbf16, #tpu.memory_space<vmem>>, vector<512x256xbf16>
    %cst_74 = arith.constant dense<0.000000e+00> : vector<8x256xf32>
    %156 = tpu.matmul %154, %155, %cst_74 {dimension_numbers = #tpu.dot_dimension_numbers<[1], [0], [0], [1], [0, 0, 1, 1], [], []>} : vector<8x512xbf16>, vector<512x256xbf16>, vector<8x256xf32> -> vector<8x256xf32>
    %c0_75 = arith.constant 0 : index
    %c0_76 = arith.constant 0 : index
    %157 = vector.load %arg3[%c0_75, %c0_76] : memref<1x256xf32, #tpu.memory_space<vmem>>, vector<1x256xf32>
    %158 = vector.broadcast %157 : vector<1x256xf32> to vector<8x256xf32>
    %159 = arith.addf %156, %158 : vector<8x256xf32>
    %cst_77 = arith.constant 0.000000e+00 : f32
    %160 = vector.broadcast %cst_77 : f32 to vector<8x256xf32>
    %161 = arith.maximumf %159, %160 : vector<8x256xf32>
    %162 = arith.truncf %161 : vector<8x256xf32> to vector<8x256xbf16>
    %c0_78 = arith.constant 0 : index
    %c0_79 = arith.constant 0 : index
    %163 = vector.load %arg4[%c0_78, %c0_79] : memref<256x128xbf16, #tpu.memory_space<vmem>>, vector<256x128xbf16>
    %cst_80 = arith.constant dense<0.000000e+00> : vector<8x128xf32>
    %164 = tpu.matmul %162, %163, %cst_80 {dimension_numbers = #tpu.dot_dimension_numbers<[1], [0], [0], [1], [0, 0, 1, 1], [], []>} : vector<8x256xbf16>, vector<256x128xbf16>, vector<8x128xf32> -> vector<8x128xf32>
    %c0_81 = arith.constant 0 : index
    %c0_82 = arith.constant 0 : index
    %165 = vector.load %arg5[%c0_81, %c0_82] : memref<1x128xf32, #tpu.memory_space<vmem>>, vector<1x128xf32>
    %166 = vector.broadcast %165 : vector<1x128xf32> to vector<8x128xf32>
    %167 = arith.addf %164, %166 : vector<8x128xf32>
    %cst_83 = arith.constant 0.000000e+00 : f32
    %168 = vector.broadcast %cst_83 : f32 to vector<8x128xf32>
    %169 = arith.maximumf %167, %168 : vector<8x128xf32>
    %170 = arith.truncf %169 : vector<8x128xf32> to vector<8x128xbf16>
    %c0_84 = arith.constant 0 : index
    %c0_85 = arith.constant 0 : index
    %171 = vector.load %arg6[%c0_84, %c0_85] : memref<128x128xbf16, #tpu.memory_space<vmem>>, vector<128x128xbf16>
    %cst_86 = arith.constant dense<0.000000e+00> : vector<8x128xf32>
    %172 = tpu.matmul %170, %171, %cst_86 {dimension_numbers = #tpu.dot_dimension_numbers<[1], [0], [0], [1], [0, 0, 1, 1], [], []>} : vector<8x128xbf16>, vector<128x128xbf16>, vector<8x128xf32> -> vector<8x128xf32>
    %c0_87 = arith.constant 0 : index
    %c0_88 = arith.constant 0 : index
    %173 = vector.load %arg7[%c0_87, %c0_88] : memref<1x128xf32, #tpu.memory_space<vmem>>, vector<1x128xf32>
    %174 = vector.broadcast %173 : vector<1x128xf32> to vector<8x128xf32>
    %175 = arith.addf %172, %174 : vector<8x128xf32>
    %c0_89 = arith.constant 0 : index
    %c0_90 = arith.constant 0 : index
    %176 = vector.load %arg8[%c0_89, %c0_90] : memref<8x128xf32, #tpu.memory_space<vmem>>, vector<8x128xf32>
    tpu.vector_store %arg8[%c0_89, %c0_90], %175 {strides = array<i32>} : memref<8x128xf32, #tpu.memory_space<vmem>>, vector<8x128xf32>,
    return
  }
}

</mosaic_0001>

<bundles_post_ra>
// kernel: convnet_forward.1
= control target key start
LH: loop header
LB: loop body
LE: loop exit
PB: predicated region body
PF: predicated region fallthrough
CT: control target
= control target key end

     0   :  { %s2300_s13 = smov 108   ;;  %s2301_s14 = smov 116   ;;  %vm45_vm0 = vcmask 1043456   ;;  %vm69_vm1 = vcmask 965632   ;;  %vm102_vm2 = vcmask 883712   ;;  %vm91_vm3 = vcmask 949248   ;;  %s3208_s0 = inlined_call_operand.vmem [shape: f32[32,384], index: 0, kind: input, shape index: {}]   ;;  %s3209_s1 = inlined_call_operand.vmem [shape: bf16[32,304], index: 1, kind: input, shape index: {}]   ;;  %s3210_s2 = inlined_call_operand.vmem [shape: bf16[512,256], index: 2, kind: input, shape index: {}]   ;;  %s3211_s4 = inlined_call_operand.vmem [shape: bf16[256,128], index: 4, kind: input, shape index: {}]   ;;  %s3212_s5 = inlined_call_operand.vmem [shape: f32[1,128], index: 5, kind: input, shape index: {}]   ;;  %s3213_s3 = inlined_call_operand.vmem [shape: f32[1,256], index: 3, kind: input, shape index: {}]   ;;  %s3214_s6 = inlined_call_operand.vmem [shape: bf16[128,128], index: 6, kind: input, shape index: {}]   ;;  %s3215_s7 = inlined_call_operand.vmem [shape: f32[1,128], index: 7, kind: input, shape index: {}]   ;;  %s3216_s8 = inlined_call_operand.vmem [shape: f32[8,128], index: 8, kind: output, shape index: {}]  }
   0x1   :  { %v128_v0 = vld [vmem:[%s3208_s0 + $0x18] sm:$0xff]  ;;  %v129_v1 = vld [vmem:[%s3208_s0 + $0x20] sm:$0xff]  ;;  %v32_v4 = vld [vmem:[%s3208_s0 + $0x8] sm:$0xff]  ;;  %s2302_s17 = smov 118   ;;  %s2303_s22 = smov 117   ;;  %vm392_vm4 = vcmask 1040384  }
   0x2   :  { %v2360_v2 = vpack.c.bf16 %v129_v1, %v128_v0  ;;  %v31_v3 = vld [vmem:[%s3208_s0] sm:$0xff]  ;;  %v130_v6 = vld [vmem:[%s3208_s0 + $0x28] sm:$0xff]  ;;  %v305_v9 = vld [vmem:[%s3208_s0 + $0x50] sm:$0xff]  ;;  %s2304_s23 = smov 127   ;;  %s2305_s24 = smov 126   ;;  %vm395_vm6 = vcmask 1044484  }
   0x3   :  { %v2368_v5 = vpack.c.bf16 %v32_v4, %v31_v3  ;;  %v2381_v7 = vpack.c.bf16 %v130_v6, %v130_v6  ;;  %v304_v8 = vld [vmem:[%s3208_s0 + $0x48] sm:$0xff]  ;;  %v33_v11 = vld [vmem:[%s3208_s0 + $0x10] sm:$0xff]  ;;  %s2306_s27 = smov 106   ;;  %s2307_s28 = smov 107   ;;  %v306_v13 = vld [vmem:[%s3208_s0 + $0x58] sm:$0xff]  ;;  %vm80_vm10 = vcmask 957440  }
   0x4   :  { %186 = vrot.lane.b32.xlu1 %v2360_v2, %s2300_s13  ;;  %132 = vst [vmem:[#allocation2 + $0x48] sm:$0xff] %v2360_v2  ;;  %176 = vrot.lane.b32.xlu0 %v2360_v2, %s2301_s14  ;;  %v307_v10 = vpack.c.bf16 %v305_v9, %v304_v8  ;;  %v36_v12 = vpack.c.bf16 %v33_v11, %v33_v11  ;;  %v216_v15 = vld [vmem:[%s3208_s0 + $0x30] sm:$0xff]  ;;  %v217_v16 = vld [vmem:[%s3208_s0 + $0x38] sm:$0xff]  ;;  %vm393_vm5 = vsmask.f32 256  ;;  %vm404_vm13 = vcmask 1047556  }
   0x5   :  { %156 = vrot.lane.b32.xlu2 %v2360_v2, %s2302_s17  ;;  %35 = vst [vmem:[#allocation2] sm:$0xff] %v2368_v5  ;;  %v309_v14 = vpack.c.bf16 %v306_v13, %v306_v13  ;;  %v2445_v17 = vpack.c.bf16 %v217_v16, %v216_v15  ;;  %v218_v25 = vld [vmem:[%s3208_s0 + $0x40] sm:$0xff]  ;;  %vm396_vm7 = vsmask.f32 4352  ;;  %vm2494_vm8 = vmand %vm392_vm4, %vm393_vm5  ;;  %vm402_vm12 = vsmask.f32 7938 }
   0x6   :  { %308 = vst [vmem:[#allocation2 + $0xd8] sm:$0xff] %v307_v10  ;;  %v2473_v29 = vpack.c.bf16 %v218_v25, %v218_v25  ;;  %v399_v42 = vld [vmem:[#allocation2 + $0x120] sm:$0x11]  ;;  %vm397_vm9 = vmand %vm395_vm6, %vm396_vm7  ;;  %vm405_vm15 = vsmask.f32 7954  ;;  %vm58_vm5 = vcmask 1031168  }
   0x7   :  { %220 = vst [vmem:[#allocation2 + $0x90] sm:$0xff] %v2445_v17  ;;  %vm398_vm11 = vmor %vm397_vm9, %vm2494_vm8  ;;  %vm47_vm7 = vcmask 1039360   ;;  %v2308_v3 = vmov 0  }
   0x8   :  { %v400_v48 = vsel %vm398_vm11, 1065369472, %v399_v42  ;;  %vm2514_vm14 = vmand %vm45_vm0, %vm402_vm12  ;;  %411 = vst [vmem:[#allocation2 + $0x128] sm:$0xff] %v2308_v3  ;;  %vm124_vm11 = vcmask 867328  }
   0x9   :  { %401 = vst [vmem:[#allocation2 + $0x120] sm:$0x11] %v400_v48  ;;  %vm406_vm6 = vmand %vm404_vm13, %vm405_vm15  ;;  %vm113_vm13 = vcmask 875520  }
   0xa   :  { %vm407_vm9 = vmor %vm406_vm6, %vm2514_vm14  ;;  %807 = vst [vmem:[#allocation3] sm:$0xff] %v2308_v3  ;;  %vm678_vm14 = vcmask 392192  }
   0xb   :  { %808 = vst [vmem:[#allocation3 + $0x8] sm:$0xff] %v2308_v3 }
   0xc   :  { %188 = vrot.lane.b32.xlu1 %v2381_v7, %s2300_s13  ;;  %178 = vrot.lane.b32.xlu0 %v2381_v7, %s2301_s14 }
   0xd   :  { %158 = vrot.lane.b32.xlu2 %v2381_v7, %s2302_s17 }
  0x10   :  { %v408_v1 = vld [vmem:[#allocation2 + $0x120] sm:$0xff] }
  0x11   :  { %v409_v9 = vsel %vm407_vm9, 0, %v408_v1 }
  0x12   :  { %410 = vst [vmem:[#allocation2 + $0x120] sm:$0xff] %v409_v9 }
  0x14   :  { %168 = vrot.lane.b32.xlu1 %v2381_v7, %s2303_s22  ;;  %166 = vrot.lane.b32.xlu0 %v2360_v2, %s2303_s22 }
  0x15   :  { %136 = vrot.lane.b32.xlu2 %v2360_v2, %s2304_s23 }
  0x1c   :  { %146 = vrot.lane.b32.xlu1 %v2360_v2, %s2305_s24  ;;  %138 = vrot.lane.b32.xlu0 %v2381_v7, %s2304_s23 }
  0x1d   :  { %148 = vrot.lane.b32.xlu2 %v2381_v7, %s2305_s24 }
  0x24   :  { %119 = vrot.lane.b32.xlu1 %v36_v12, %s2306_s27  ;;  %117 = vrot.lane.b32.xlu0 %v2368_v5, %s2306_s27 }
  0x25   :  { %95 = vrot.lane.b32.xlu2 %v2368_v5, %s2300_s13 }
  0x2c   :  { %106 = vrot.lane.b32.xlu1 %v2368_v5, %s2307_s28  ;;  %97 = vrot.lane.b32.xlu0 %v36_v12, %s2300_s13 }
  0x2d   :  { %108 = vrot.lane.b32.xlu2 %v36_v12, %s2307_s28 }
  0x34   :  { %374 = vrot.lane.b32.xlu1 %v309_v14, %s2307_s28  ;;  %372 = vrot.lane.b32.xlu0 %v307_v10, %s2307_s28 }
  0x35   :  { %382 = vrot.lane.b32.xlu2 %v307_v10, %s2306_s27 }
  0x3c   :  { %73 = vrot.lane.b32.xlu1 %v2368_v5, %s2303_s22  ;;  %384 = vrot.lane.b32.xlu0 %v309_v14, %s2306_s27 }
  0x3d   :  { %75 = vrot.lane.b32.xlu2 %v36_v12, %s2303_s22 }
  0x44   :  { %86 = vrot.lane.b32.xlu1 %v36_v12, %s2301_s14  ;;  %84 = vrot.lane.b32.xlu0 %v2368_v5, %s2301_s14 }
  0x45   :  { %352 = vrot.lane.b32.xlu2 %v307_v10, %s2301_s14 }
  0x4c   :  { %362 = vrot.lane.b32.xlu1 %v307_v10, %s2300_s13  ;;  %354 = vrot.lane.b32.xlu0 %v309_v14, %s2301_s14 }
  0x4d   :  { %364 = vrot.lane.b32.xlu2 %v309_v14, %s2300_s13 }
  0x54   :  { %334 = vrot.lane.b32.xlu1 %v309_v14, %s2302_s17  ;;  %332 = vrot.lane.b32.xlu0 %v307_v10, %s2302_s17 }
  0x55   :  { %342 = vrot.lane.b32.xlu2 %v307_v10, %s2303_s22 }
  0x5c   :  { %51 = vrot.lane.b32.xlu1 %v2368_v5, %s2305_s24  ;;  %344 = vrot.lane.b32.xlu0 %v309_v14, %s2303_s22 }
  0x5d   :  { %53 = vrot.lane.b32.xlu2 %v36_v12, %s2305_s24 }
  0x5f   :  { %v157_v18 = vpop.permute.xlu2 %156 }
  0x60   :  { %v160_v19 = vrot.slane %v157_v18, 4 }
  0x64   :  { %64 = vrot.lane.b32.xlu1 %v36_v12, %s2302_s17  ;;  %62 = vrot.lane.b32.xlu0 %v2368_v5, %s2302_s17 }
  0x65   :  { %312 = vrot.lane.b32.xlu2 %v307_v10, %s2304_s23 }
  0x67   :  { %v159_v20 = vpop.permute.xlu2 %158 }
  0x68   :  { %v161_v21 = vrot.slane %v159_v20, 4 }
  0x6a   :  { %v162_v22 = vsel %vm45_vm0, %v160_v19, %v161_v21 }
  0x6b   :  { %v163_v23 = vsel %vm69_vm1, %v157_v18, %v162_v22  ;;  %v2200_v22 = vld [vmem:[#allocation2 + $0x124] sm:$0xf0] }
  0x6c   :  { %322 = vrot.lane.b32.xlu1 %v307_v10, %s2305_s24  ;;  %314 = vrot.lane.b32.xlu0 %v309_v14, %s2304_s23  ;;  %165 = vst [vmem:[#allocation2 + $0x60] sm:$0xff] %v163_v23 }
  0x6d   :  { %324 = vrot.lane.b32.xlu2 %v309_v14, %s2305_s24 }
  0x6f   :  { %v2461_v24 = vpop.permute.xlu2 %136 }
  0x70   :  { %v140_v57 = vrot.slane %v2461_v24, 4 }
  0x73   :  { %v1694_v6 = vld [vmem:[#allocation2 + $0x60] sm:$0xf]  ;;  %v2175_v8 = vld [vmem:[#allocation2 + $0x64] sm:$0xf] }
  0x74   :  { %41 = vrot.lane.b32.xlu1 %v36_v12, %s2304_s23  ;;  %39 = vrot.lane.b32.xlu0 %v2368_v5, %s2304_s23 }
  0x75   :  { %294 = vrot.lane.b32.xlu2 %v2445_v17, %s2306_s27 }
  0x76   :  { %v187_v26 = vpop.permute.xlu1 %186  ;;  %v177_v27 = vpop.permute.xlu0 %176 }
  0x77   :  { %v2471_v28 = vpop.permute.xlu2 %148  ;;  %v190_v30 = vrot.slane %v187_v26, 4  ;;  %v180_v33 = vrot.slane %v177_v27, 4 }
  0x78   :  { %v151_v58 = vrot.slane %v2471_v28, 4 }
  0x7c   :  { %274 = vrot.lane.b32.xlu1 %v2445_v17, %s2300_s13  ;;  %296 = vrot.lane.b32.xlu0 %v2473_v29, %s2306_s27 }
  0x7d   :  { %276 = vrot.lane.b32.xlu2 %v2473_v29, %s2300_s13 }
  0x7e   :  { %v189_v31 = vpop.permute.xlu1 %188  ;;  %v179_v32 = vpop.permute.xlu0 %178 }
  0x7f   :  { %v191_v34 = vrot.slane %v189_v31, 4  ;;  %v181_v35 = vrot.slane %v179_v32, 4  ;;  %v2481_v36 = vpop.permute.xlu2 %95 }
  0x81   :  { %v192_v37 = vsel %vm45_vm0, %v190_v30, %v191_v34  ;;  %v182_v38 = vsel %vm45_vm0, %v180_v33, %v181_v35  ;;  %v99_v34 = vrot.slane %v2481_v36, 4 }
  0x82   :  { %v193_v39 = vsel %vm102_vm2, %v187_v26, %v192_v37  ;;  %v183_v40 = vsel %vm91_vm3, %v177_v27, %v182_v38 }
  0x83   :  { %195 = vst [vmem:[#allocation2 + $0x78] sm:$0xff] %v193_v39 }
  0x84   :  { %185 = vst [vmem:[#allocation2 + $0x70] sm:$0xff] %v183_v40  ;;  %286 = vrot.lane.b32.xlu1 %v2473_v29, %s2307_s28  ;;  %284 = vrot.lane.b32.xlu0 %v2445_v17, %s2307_s28 }
  0x85   :  { %254 = vrot.lane.b32.xlu2 %v2445_v17, %s2303_s22 }
  0x86   :  { %v169_v43 = vpop.permute.xlu1 %168  ;;  %v167_v44 = vpop.permute.xlu0 %166 }
  0x87   :  { %v171_v45 = vrot.slane %v169_v43, 4  ;;  %v170_v46 = vrot.slane %v167_v44, 4  ;;  %v2498_v47 = vpop.permute.xlu2 %108  ;;  %v1680_v43 = vld [vmem:[#allocation2 + $0x48] sm:$0xf0] }
  0x88   :  { %v111_v35 = vrot.slane %v2498_v47, 4 }
  0x89   :  { %v172_v49 = vsel %vm45_vm0, %v170_v46, %v171_v45 }
  0x8a   :  { %v173_v50 = vsel %vm80_vm10, %v167_v44, %v172_v49  ;;  %v2178_v51 = vld [vmem:[#allocation2 + $0x74] sm:$0xf0]  ;;  %v1704_v52 = vld [vmem:[#allocation2 + $0x78] sm:$0xf0] }
  0x8b   :  { %175 = vst [vmem:[#allocation2 + $0x68] sm:$0xff] %v173_v50  ;;  %v1702_v53 = vld [vmem:[#allocation2 + $0x70] sm:$0xf]  ;;  %v2177_v54 = vld [vmem:[#allocation2 + $0x74] sm:$0xf] }
  0x8c   :  { %264 = vrot.lane.b32.xlu1 %v2445_v17, %s2301_s14  ;;  %256 = vrot.lane.b32.xlu0 %v2473_v29, %s2303_s22  ;;  %v1703_v55 = vor.u32 %v2178_v51, %v1702_v53  ;;  %v1707_v56 = vor.u32 %v2177_v54, %v1704_v52 }
  0x8d   :  { %266 = vrot.lane.b32.xlu2 %v2473_v29, %s2301_s14 }
  0x8e   :  { %685 = vmatpush.bf16.msra.mxu0 %v1703_v55  ;;  %742 = vmatpush.bf16.msra.mxu3 %v1707_v56  ;;  %v147_v60 = vpop.permute.xlu1 %146  ;;  %v139_v61 = vpop.permute.xlu0 %138 }
  0x8f   :  { %v150_v62 = vrot.slane %v147_v60, 4  ;;  %v141_v63 = vrot.slane %v139_v61, 4  ;;  %v2518_v0 = vpop.permute.xlu2 %382 }
  0x91   :  { %v152_v4 = vsel %vm45_vm0, %v150_v62, %v151_v58  ;;  %v142_v5 = vsel %vm45_vm0, %v140_v57, %v141_v63  ;;  %v386_v63 = vrot.slane %v2518_v0, 4 }
  0x92   :  { %v153_v10 = vsel %vm58_vm5, %v147_v60, %v152_v4  ;;  %v143_v11 = vsel %vm47_vm7, %v2461_v24, %v142_v5  ;;  %v2176_v12 = vld [vmem:[#allocation2 + $0x64] sm:$0xf0]  ;;  %v1696_v13 = vld [vmem:[#allocation2 + $0x68] sm:$0xf0]  ;;  %v1790_v24 = vld [vmem:[#allocation2 + $0x120] sm:$0xf] }
  0x93   :  { %155 = vst [vmem:[#allocation2 + $0x58] sm:$0xff] %v153_v10  ;;  %v1695_v14 = vor.u32 %v2176_v12, %v1694_v6  ;;  %v1699_v15 = vor.u32 %v2175_v8, %v1696_v13  ;;  %v1791_v28 = vor.u32 %v2200_v22, %v1790_v24 }
  0x94   :  { %145 = vst [vmem:[#allocation2 + $0x50] sm:$0xff] %v143_v11  ;;  %236 = vrot.lane.b32.xlu1 %v2473_v29, %s2305_s24  ;;  %234 = vrot.lane.b32.xlu0 %v2445_v17, %s2305_s24 }
  0x95   :  { %686 = vmatpush.bf16.msra.mxu0 %v1695_v14  ;;  %743 = vmatpush.bf16.msra.mxu3 %v1699_v15 }
  0x96   :  { %v120_v16 = vpop.permute.xlu1 %119  ;;  %v118_v18 = vpop.permute.xlu0 %117  ;;  %244 = vrot.lane.b32.xlu2 %v2445_v17, %s2302_s17  ;;  %728 = vmatpush.bf16.msra.mxu2 %v1791_v28 }
  0x97   :  { %v122_v19 = vrot.slane %v120_v16, 4  ;;  %v121_v20 = vrot.slane %v118_v18, 4  ;;  %v2533_v21 = vpop.permute.xlu2 %75 }
  0x98   :  { %v78_v1 = vrot.slane %v2533_v21, 4 }
  0x99   :  { %v123_v23 = vsel %vm45_vm0, %v121_v20, %v122_v19 }
  0x9a   :  { %v125_v25 = vsel %vm124_vm11, %v118_v18, %v123_v23  ;;  %v2174_v26 = vld [vmem:[#allocation2 + $0x54] sm:$0xf0]  ;;  %v1688_v27 = vld [vmem:[#allocation2 + $0x58] sm:$0xf0] }
  0x9b   :  { %127 = vst [vmem:[#allocation2 + $0x40] sm:$0xff] %v125_v25  ;;  %v1686_v30 = vld [vmem:[#allocation2 + $0x50] sm:$0xf]  ;;  %v2173_v31 = vld [vmem:[#allocation2 + $0x54] sm:$0xf] }
  0x9c   :  { %224 = vrot.lane.b32.xlu1 %v2445_v17, %s2304_s23  ;;  %246 = vrot.lane.b32.xlu0 %v2473_v29, %s2302_s17  ;;  %v1687_v32 = vor.u32 %v2174_v26, %v1686_v30  ;;  %v1691_v33 = vor.u32 %v2173_v31, %v1688_v27  ;;  %v2172_v17 = vld [vmem:[#allocation2 + $0x44] sm:$0xf0] }
  0x9e   :  { %687 = vmatpush.bf16.msra.mxu0 %v1687_v32  ;;  %744 = vmatpush.bf16.msra.mxu3 %v1691_v33  ;;  %v107_v37 = vpop.permute.xlu1 %106  ;;  %v98_v38 = vpop.permute.xlu0 %97 }
  0x9f   :  { %v110_v39 = vrot.slane %v107_v37, 4  ;;  %v100_v40 = vrot.slane %v98_v38, 4  ;;  %v2543_v42 = vpop.permute.xlu2 %352  ;;  %226 = vrot.lane.b32.xlu2 %v2473_v29, %s2304_s23 }
  0xa0   :  { %v356_v22 = vrot.slane %v2543_v42, 4 }
  0xa1   :  { %v112_v44 = vsel %vm45_vm0, %v110_v39, %v111_v35  ;;  %v101_v45 = vsel %vm45_vm0, %v99_v34, %v100_v40 }
  0xa2   :  { %v103_v46 = vsel %vm102_vm2, %v2481_v36, %v101_v45  ;;  %v1678_v47 = vld [vmem:[#allocation2 + $0x40] sm:$0xf]  ;;  %v2171_v48 = vld [vmem:[#allocation2 + $0x44] sm:$0xf]  ;;  %v114_v49 = vsel %vm113_vm13, %v107_v37, %v112_v44 }
  0xa3   :  { %105 = vst [vmem:[#allocation2 + $0x30] sm:$0xff] %v103_v46  ;;  %v1679_v50 = vor.u32 %v2172_v17, %v1678_v47  ;;  %v1683_v51 = vor.u32 %v2171_v48, %v1680_v43 }
  0xa4   :  { %198 = vrot.lane.b32.xlu1 %v2381_v7, %s2307_s28  ;;  %196 = vrot.lane.b32.xlu0 %v2360_v2, %s2307_s28  ;;  %116 = vst [vmem:[#allocation2 + $0x38] sm:$0xff] %v114_v49 }
  0xa5   :  { %688 = vmatpush.bf16.msra.mxu0 %v1679_v50  ;;  %745 = vmatpush.bf16.msra.mxu3 %v1683_v51 }
  0xa6   :  { %v375_v29 = vpop.permute.xlu1 %374  ;;  %v373_v52 = vpop.permute.xlu0 %372 }
  0xa7   :  { %v377_v53 = vrot.slane %v375_v29, 4  ;;  %v376_v36 = vrot.slane %v373_v52, 4  ;;  %v365_v54 = vpop.permute.xlu2 %364  ;;  %206 = vrot.lane.b32.xlu2 %v2360_v2, %s2306_s27 }
  0xa8   :  { %v367_v23 = vrot.slane %v365_v54, 4 }
  0xa9   :  { %v378_v55 = vsel %vm45_vm0, %v376_v36, %v377_v53 }
  0xaa   :  { %v379_v56 = vsel %vm113_vm13, %v373_v52, %v378_v55  ;;  %v1670_v57 = vld [vmem:[#allocation2 + $0x30] sm:$0xf]  ;;  %v2169_v58 = vld [vmem:[#allocation2 + $0x34] sm:$0xf] }
  0xab   :  { %381 = vst [vmem:[#allocation2 + $0x110] sm:$0xff] %v379_v56  ;;  %v2170_v59 = vld [vmem:[#allocation2 + $0x34] sm:$0xf0]  ;;  %v1672_v60 = vld [vmem:[#allocation2 + $0x38] sm:$0xf0] }
  0xac   :  { %208 = vrot.lane.b32.xlu0 %v2381_v7, %s2306_s27  ;;  %v1671_v61 = vor.u32 %v2170_v59, %v1670_v57  ;;  %v1675_v62 = vor.u32 %v2169_v58, %v1672_v60 }
  0xae   :  { %689 = vmatpush.bf16.msra.mxu0 %v1671_v61  ;;  %746 = vmatpush.bf16.msra.mxu3 %v1675_v62  ;;  %v74_v2 = vpop.permute.xlu1 %73  ;;  %v385_v3 = vpop.permute.xlu0 %384 }
  0xaf   :  { %v77_v4 = vrot.slane %v74_v2, 4  ;;  %v387_v5 = vrot.slane %v385_v3, 4  ;;  %v343_v9 = vpop.permute.xlu2 %342 }
  0xb0   :  { %v346_v49 = vrot.slane %v343_v9, 4 }
  0xb1   :  { %v79_v6 = vsel %vm45_vm0, %v77_v4, %v78_v1  ;;  %v388_v8 = vsel %vm45_vm0, %v386_v63, %v387_v5 }
  0xb2   :  { %v81_v10 = vsel %vm80_vm10, %v74_v2, %v79_v6  ;;  %v389_v7 = vsel %vm124_vm11, %v2518_v0, %v388_v8  ;;  %v1782_v18 = vld [vmem:[#allocation2 + $0x110] sm:$0xf] }
  0xb3   :  { %83 = vst [vmem:[#allocation2 + $0x20] sm:$0xff] %v81_v10 }
  0xb4   :  { %391 = vst [vmem:[#allocation2 + $0x118] sm:$0xff] %v389_v7 }
  0xb6   :  { %v87_v11 = vpop.permute.xlu1 %86  ;;  %v85_v12 = vpop.permute.xlu0 %84 }
  0xb7   :  { %v89_v13 = vrot.slane %v87_v11, 4  ;;  %v88_v14 = vrot.slane %v85_v12, 4  ;;  %v54_v20 = vpop.permute.xlu2 %53 }
  0xb8   :  { %v56_v50 = vrot.slane %v54_v20, 4 }
  0xb9   :  { %v90_v15 = vsel %vm45_vm0, %v88_v14, %v89_v13 }
  0xba   :  { %v92_v16 = vsel %vm91_vm3, %v85_v12, %v90_v15  ;;  %v1662_v30 = vld [vmem:[#allocation2 + $0x20] sm:$0xf]  ;;  %v2167_v34 = vld [vmem:[#allocation2 + $0x24] sm:$0xf] }
  0xbb   :  { %94 = vst [vmem:[#allocation2 + $0x28] sm:$0xff] %v92_v16  ;;  %v2198_v19 = vld [vmem:[#allocation2 + $0x114] sm:$0xf0] }
  0xbc   :  { %v1783_v21 = vor.u32 %v2198_v19, %v1782_v18 }
  0xbe   :  { %729 = vmatpush.bf16.msra.mxu2 %v1783_v21  ;;  %v363_v0 = vpop.permute.xlu1 %362  ;;  %v355_v24 = vpop.permute.xlu0 %354 }
  0xbf   :  { %v366_v25 = vrot.slane %v363_v0, 4  ;;  %v357_v26 = vrot.slane %v355_v24, 4  ;;  %v313_v39 = vpop.permute.xlu2 %312 }
  0xc1   :  { %v368_v27 = vsel %vm45_vm0, %v366_v25, %v367_v23  ;;  %v358_v28 = vsel %vm45_vm0, %v356_v22, %v357_v26 }
  0xc2   :  { %v369_v31 = vsel %vm102_vm2, %v363_v0, %v368_v27  ;;  %v359_v32 = vsel %vm91_vm3, %v2543_v42, %v358_v28  ;;  %v2168_v33 = vld [vmem:[#allocation2 + $0x24] sm:$0xf0]  ;;  %v1664_v35 = vld [vmem:[#allocation2 + $0x28] sm:$0xf0] }
  0xc3   :  { %371 = vst [vmem:[#allocation2 + $0x108] sm:$0xff] %v369_v31  ;;  %v1663_v37 = vor.u32 %v2168_v33, %v1662_v30  ;;  %v1667_v38 = vor.u32 %v2167_v34, %v1664_v35  ;;  %v1630_v31 = vld [vmem:[%s3209_s1 + $0x8] sm:$0xf] }
  0xc4   :  { %361 = vst [vmem:[#allocation2 + $0x100] sm:$0xff] %v359_v32  ;;  %v2159_v32 = vld [vmem:[%s3209_s1 + $0x10] sm:$0xf0] }
  0xc5   :  { %690 = vmatpush.bf16.msra.mxu0 %v1663_v37  ;;  %747 = vmatpush.bf16.msra.mxu3 %v1667_v38  ;;  %v2599_v37 = vor.u32 %v2159_v32, %v1630_v31 }
  0xc6   :  { %v335_v40 = vpop.permute.xlu1 %334  ;;  %v333_v17 = vpop.permute.xlu0 %332 }
  0xc7   :  { %v337_v43 = vrot.slane %v335_v40, 4  ;;  %v336_v44 = vrot.slane %v333_v17, 4  ;;  %v325_v36 = vpop.permute.xlu2 %324 }
  0xc8   :  { %v327_v10 = vrot.slane %v325_v36, 4  ;;  %v1622_v36 = vld [vmem:[%s3209_s1] sm:$0xf] }
  0xc9   :  { %v338_v45 = vsel %vm45_vm0, %v336_v44, %v337_v43 }
  0xca   :  { %v339_v46 = vsel %vm69_vm1, %v333_v17, %v338_v45  ;;  %v2196_v47 = vld [vmem:[#allocation2 + $0x104] sm:$0xf0] }
  0xcb   :  { %341 = vst [vmem:[#allocation2 + $0xf0] sm:$0xff] %v339_v46  ;;  %v1774_v42 = vld [vmem:[#allocation2 + $0x100] sm:$0xf] }
  0xcc   :  { %v1775_v48 = vor.u32 %v2196_v47, %v1774_v42 }
  0xce   :  { %730 = vmatpush.bf16.msra.mxu2 %v1775_v48  ;;  %v52_v51 = vpop.permute.xlu1 %51  ;;  %v345_v29 = vpop.permute.xlu0 %344 }
  0xcf   :  { %v55_v52 = vrot.slane %v52_v51, 4  ;;  %v347_v53 = vrot.slane %v345_v29, 4  ;;  %v2584_v63 = vpop.permute.xlu2 %294  ;;  %v2163_v29 = vld [vmem:[#allocation2 + $0x4] sm:$0xf] }
  0xd0   :  { %v298_v43 = vrot.slane %v2584_v63, 4 }
  0xd1   :  { %v57_v54 = vsel %vm45_vm0, %v55_v52, %v56_v50  ;;  %v348_v55 = vsel %vm45_vm0, %v346_v49, %v347_v53  ;;  %1796 = vmatmul.msk.bf16.vlgmr.msra.gmra.mxu2 %vm678_vm14, %v2599_v37  ;;  %v2199_v49 = vld [vmem:[#allocation2 + $0x124] sm:$0xf]  ;;  %v1792_v50 = vld [vmem:[#allocation2 + $0x128] sm:$0xf0] }
  0xd2   :  { %v59_v56 = vsel %vm58_vm5, %v52_v51, %v57_v54  ;;  %v349_v57 = vsel %vm80_vm10, %v343_v9, %v348_v55  ;;  %v1766_v2 = vld [vmem:[#allocation2 + $0xf0] sm:$0xf]  ;;  %v2193_v3 = vld [vmem:[#allocation2 + $0xf4] sm:$0xf]  ;;  %v316_v9 = vrot.slane %v313_v39, 4 }
  0xd3   :  { %61 = vst [vmem:[#allocation2 + $0x10] sm:$0xff] %v59_v56  ;;  %v1646_v51 = vld [vmem:[#allocation2] sm:$0xf]  ;;  %v2158_v54 = vld [vmem:[%s3209_s1 + $0x8] sm:$0xf0] }
  0xd4   :  { %351 = vst [vmem:[#allocation2 + $0xf8] sm:$0xff] %v349_v57 }
  0xd6   :  { %v65_v58 = vpop.permute.xlu1 %64  ;;  %v63_v59 = vpop.permute.xlu0 %62 }
  0xd7   :  { %v67_v60 = vrot.slane %v65_v58, 4  ;;  %v66_v61 = vrot.slane %v63_v59, 4  ;;  %v277_v24 = vpop.permute.xlu2 %276 }
  0xd8   :  { %v279_v44 = vrot.slane %v277_v24, 4 }
  0xd9   :  { %v68_v62 = vsel %vm45_vm0, %v66_v61, %v67_v60 }
  0xda   :  { %v70_v1 = vsel %vm69_vm1, %v63_v59, %v68_v62  ;;  %v1654_v16 = vld [vmem:[#allocation2 + $0x10] sm:$0xf]  ;;  %v2165_v21 = vld [vmem:[#allocation2 + $0x14] sm:$0xf]  ;;  %v1795_v59 = vor.u32 %v2199_v49, %v1792_v50  ;;  %v1623_v62 = vor.u32 %v2158_v54, %v1622_v36 }
  0xdb   :  { %72 = vst [vmem:[#allocation2 + $0x18] sm:$0xff] %v70_v1  ;;  %v2194_v4 = vld [vmem:[#allocation2 + $0xf4] sm:$0xf0]  ;;  %v1768_v5 = vld [vmem:[#allocation2 + $0xf8] sm:$0xf0] }
  0xdc   :  { %v1767_v6 = vor.u32 %v2194_v4, %v1766_v2  ;;  %v1771_v8 = vor.u32 %v2193_v3, %v1768_v5  ;;  %v1784_v1 = vld [vmem:[#allocation2 + $0x118] sm:$0xf0] }
  0xde   :  { %704 = vmatpush.bf16.msra.mxu1 %v1767_v6  ;;  %761 = vmatpush.bf16.msrb.mxu2 %v1771_v8  ;;  %v323_v7 = vpop.permute.xlu1 %322  ;;  %v315_v11 = vpop.permute.xlu0 %314  ;;  %v2197_v6 = vld [vmem:[#allocation2 + $0x114] sm:$0xf] }
  0xdf   :  { %v326_v12 = vrot.slane %v323_v7, 4  ;;  %v317_v13 = vrot.slane %v315_v11, 4  ;;  %v2604_v45 = vpop.permute.xlu2 %254  ;;  %v1787_v8 = vor.u32 %v2197_v6, %v1784_v1  ;;  %v1642_v11 = vld [vmem:[%s3209_s1 + $0x20] sm:$0xf] }
  0xe1   :  { %v328_v14 = vsel %vm45_vm0, %v326_v12, %v327_v10  ;;  %v318_v15 = vsel %vm45_vm0, %v316_v9, %v317_v13  ;;  %v2190_v9 = vld [vmem:[#allocation2 + $0xd4] sm:$0xf0]  ;;  %v2162_v12 = vld [vmem:[%s3209_s1 + $0x28] sm:$0xf0] }
  0xe2   :  { %v329_v18 = vsel %vm58_vm5, %v323_v7, %v328_v14  ;;  %v319_v19 = vsel %vm47_vm7, %v313_v39, %v318_v15  ;;  %v2166_v20 = vld [vmem:[#allocation2 + $0x14] sm:$0xf0]  ;;  %v1656_v22 = vld [vmem:[#allocation2 + $0x18] sm:$0xf0]  ;;  %v2195_v14 = vld [vmem:[#allocation2 + $0x104] sm:$0xf] }
  0xe3   :  { %331 = vst [vmem:[#allocation2 + $0xe8] sm:$0xff] %v329_v18  ;;  %v1655_v23 = vor.u32 %v2166_v20, %v1654_v16  ;;  %v1659_v0 = vor.u32 %v2165_v21, %v1656_v22  ;;  %v1752_v7 = vld [vmem:[#allocation2 + $0xd8] sm:$0xf0]  ;;  %v1776_v15 = vld [vmem:[#allocation2 + $0x108] sm:$0xf0]  ;;  %v2625_v16 = vor.u32 %v2162_v12, %v1642_v11  ;;  %v258_v22 = vrot.slane %v2604_v45, 4 }
  0xe4   :  { %321 = vst [vmem:[#allocation2 + $0xe0] sm:$0xff] %v319_v19 }
  0xe5   :  { %691 = vmatpush.bf16.msra.mxu0 %v1655_v23  ;;  %748 = vmatpush.bf16.msra.mxu3 %v1659_v0  ;;  %v1779_v0 = vor.u32 %v2195_v14, %v1776_v15 }
  0xe6   :  { %v42_v25 = vpop.permute.xlu1 %41  ;;  %v40_v26 = vpop.permute.xlu0 %39  ;;  %1797 = vmatmul.msk.bf16.gmra.mxu2 %vm678_vm14, %v2625_v16 }
  0xe7   :  { %v44_v27 = vrot.slane %v42_v25, 4  ;;  %v43_v28 = vrot.slane %v40_v26, 4 }
  0xe9   :  { %v46_v30 = vsel %vm45_vm0, %v43_v28, %v44_v27 }
  0xea   :  { %v48_v33 = vsel %vm47_vm7, %v40_v26, %v46_v30  ;;  %v2192_v34 = vld [vmem:[#allocation2 + $0xe4] sm:$0xf0]  ;;  %v1760_v35 = vld [vmem:[#allocation2 + $0xe8] sm:$0xf0] }
  0xeb   :  { %50 = vst [vmem:[#allocation2 + $0x8] sm:$0xff] %v48_v33  ;;  %v1758_v38 = vld [vmem:[#allocation2 + $0xe0] sm:$0xf]  ;;  %v2191_v39 = vld [vmem:[#allocation2 + $0xe4] sm:$0xf] }
  0xec   :  { %v1759_v40 = vor.u32 %v2192_v34, %v1758_v38  ;;  %v1763_v17 = vor.u32 %v2191_v39, %v1760_v35  ;;  %v1634_v33 = vld [vmem:[%s3209_s1 + $0x18] sm:$0xf]  ;;  %v2161_v34 = vld [vmem:[%s3209_s1 + $0x20] sm:$0xf0] }
  0xee   :  { %705 = vmatpush.bf16.msra.mxu1 %v1759_v40  ;;  %762 = vmatpush.bf16.msrb.mxu2 %v1763_v17  ;;  %v275_v46 = vpop.permute.xlu1 %274  ;;  %v297_v47 = vpop.permute.xlu0 %296 }
  0xef   :  { %v278_v42 = vrot.slane %v275_v46, 4  ;;  %v299_v48 = vrot.slane %v297_v47, 4 }
  0xf1   :  { %v280_v52 = vsel %vm45_vm0, %v278_v42, %v279_v44  ;;  %v300_v53 = vsel %vm45_vm0, %v298_v43, %v299_v48 }
  0xf2   :  { %v281_v55 = vsel %vm102_vm2, %v275_v46, %v280_v52  ;;  %v301_v56 = vsel %vm124_vm11, %v2584_v63, %v300_v53  ;;  %v2164_v57 = vld [vmem:[#allocation2 + $0x4] sm:$0xf0]  ;;  %v1648_v58 = vld [vmem:[#allocation2 + $0x8] sm:$0xf0]  ;;  %v267_v63 = vpop.permute.xlu2 %266  ;;  %v1635_v46 = vor.u32 %v2161_v34, %v1634_v33 }
  0xf3   :  { %283 = vst [vmem:[#allocation2 + $0xc0] sm:$0xff] %v281_v55  ;;  %v1647_v60 = vor.u32 %v2164_v57, %v1646_v51  ;;  %v1651_v61 = vor.u32 %v2163_v29, %v1648_v58  ;;  %v269_v23 = vrot.slane %v267_v63, 4 }
  0xf4   :  { %303 = vst [vmem:[#allocation2 + $0xd0] sm:$0xff] %v301_v56 }
  0xf5   :  { %692 = vmatpush.bf16.msra.mxu0 %v1647_v60  ;;  %749 = vmatpush.bf16.msra.mxu3 %v1651_v61 }
  0xf6   :  { %v287_v2 = vpop.permute.xlu1 %286  ;;  %v285_v3 = vpop.permute.xlu0 %284 }
  0xf7   :  { %v289_v4 = vrot.slane %v287_v2, 4  ;;  %v288_v5 = vrot.slane %v285_v3, 4 }
  0xf8   :  { %693 = vmatmul.bf16.vlgmr.msra.gmra.mxu0 %v1623_v62  ;;  %750 = vmatmul.bf16.vlgmr.msra.gmra.mxu3 %v1623_v62 }
  0xf9   :  { %785 = vmatpush.bf16.msrb.mxu0 %v1795_v59  ;;  %v290_v10 = vsel %vm45_vm0, %v288_v5, %v289_v4 }
  0xfa   :  { %v291_v13 = vsel %vm113_vm13, %v285_v3, %v290_v10  ;;  %v245_v28 = vpop.permute.xlu2 %244  ;;  %v1742_v32 = vld [vmem:[#allocation2 + $0xc0] sm:$0xf]  ;;  %v2187_v40 = vld [vmem:[#allocation2 + $0xc4] sm:$0xf]  ;;  %v1718_v10 = vld [vmem:[#allocation2 + $0x90] sm:$0xf] }
  0xfb   :  { %293 = vst [vmem:[#allocation2 + $0xc8] sm:$0xff] %v291_v13  ;;  %v1750_v18 = vld [vmem:[#allocation2 + $0xd0] sm:$0xf]  ;;  %v2189_v19 = vld [vmem:[#allocation2 + $0xd4] sm:$0xf]  ;;  %v248_v56 = vrot.slane %v245_v28, 4 }
  0xfc   :  { %v1751_v20 = vor.u32 %v2190_v9, %v1750_v18  ;;  %v1755_v21 = vor.u32 %v2189_v19, %v1752_v7  ;;  %v2181_v7 = vld [vmem:[#allocation2 + $0x94] sm:$0xf] }
  0xfd   :  { %786 = vmatpush.bf16.msrb.mxu0 %v1787_v8 }
  0xfe   :  { %706 = vmatpush.bf16.msra.mxu1 %v1751_v20  ;;  %763 = vmatpush.bf16.msrb.mxu2 %v1755_v21  ;;  %v265_v24 = vpop.permute.xlu1 %264  ;;  %v257_v25 = vpop.permute.xlu0 %256 }
  0xff   :  { %v268_v26 = vrot.slane %v265_v24, 4  ;;  %v259_v27 = vrot.slane %v257_v25, 4 }
 0x101   :  { %787 = vmatpush.bf16.msrb.mxu0 %v1779_v0  ;;  %v270_v30 = vsel %vm45_vm0, %v268_v26, %v269_v23  ;;  %v260_v31 = vsel %vm45_vm0, %v258_v22, %v259_v27 }
 0x102   :  { %v271_v35 = vsel %vm91_vm3, %v265_v24, %v270_v30  ;;  %v261_v38 = vsel %vm80_vm10, %v2604_v45, %v260_v31  ;;  %v2188_v39 = vld [vmem:[#allocation2 + $0xc4] sm:$0xf0]  ;;  %v1744_v17 = vld [vmem:[#allocation2 + $0xc8] sm:$0xf0]  ;;  %v227_v52 = vpop.permute.xlu2 %226  ;;  %v1624_v30 = vld [vmem:[%s3209_s1 + $0xc] sm:$0xf0] }
 0x103   :  { %273 = vst [vmem:[#allocation2 + $0xb8] sm:$0xff] %v271_v35  ;;  %v1743_v43 = vor.u32 %v2188_v39, %v1742_v32  ;;  %v1747_v44 = vor.u32 %v2187_v40, %v1744_v17  ;;  %v229_v57 = vrot.slane %v227_v52, 4  ;;  %v1636_v39 = vld [vmem:[%s3209_s1 + $0x24] sm:$0xf0]  ;;  %v2248_v52 = vld [vmem:[%s3210_s2 + $0x174] sm:$0xf0] }
 0x104   :  { %263 = vst [vmem:[#allocation2 + $0xb0] sm:$0xff] %v261_v38 }
 0x105   :  { %707 = vmatpush.bf16.msra.mxu1 %v1743_v43  ;;  %764 = vmatpush.bf16.msrb.mxu2 %v1747_v44 }
 0x106   :  { %v237_v47 = vpop.permute.xlu1 %236  ;;  %v235_v42 = vpop.permute.xlu0 %234 }
 0x107   :  { %v239_v48 = vrot.slane %v237_v47, 4  ;;  %v238_v49 = vrot.slane %v235_v42, 4 }
 0x108   :  { %698 = vmatmul.bf16.gmra.mxu0 %v1635_v46  ;;  %755 = vmatmul.bf16.gmra.mxu3 %v1635_v46 }
 0x109   :  { %v240_v50 = vsel %vm45_vm0, %v238_v49, %v239_v48  ;;  %v2216_v48 = vld [vmem:[%s3210_s2 + $0x74] sm:$0xf0]  ;;  %v1927_v49 = vld [vmem:[%s3210_s2 + $0xf0] sm:$0xf] }
 0x10a   :  { %v241_v45 = vsel %vm58_vm5, %v235_v42, %v240_v50  ;;  %v2186_v51 = vld [vmem:[#allocation2 + $0xb4] sm:$0xf0]  ;;  %v1736_v29 = vld [vmem:[#allocation2 + $0xb8] sm:$0xf0]  ;;  %v207_v15 = vpop.permute.xlu2 %206  ;;  %v1863_v42 = vld [vmem:[%s3210_s2 + $0x70] sm:$0xf] }
 0x10b   :  { %243 = vst [vmem:[#allocation2 + $0xa0] sm:$0xff] %v241_v45  ;;  %v1734_v53 = vld [vmem:[#allocation2 + $0xb0] sm:$0xf]  ;;  %v2185_v36 = vld [vmem:[#allocation2 + $0xb4] sm:$0xf]  ;;  %v210_v22 = vrot.slane %v207_v15, 4  ;;  %v1864_v50 = vor.u32 %v2216_v48, %v1863_v42 }
 0x10c   :  { %v1735_v54 = vor.u32 %v2186_v51, %v1734_v53  ;;  %v1739_v55 = vor.u32 %v2185_v36, %v1736_v29  ;;  %v2232_v45 = vld [vmem:[%s3210_s2 + $0xf4] sm:$0xf0]  ;;  %v1991_v29 = vld [vmem:[%s3210_s2 + $0x170] sm:$0xf] }
 0x10d   :  { %v1928_v51 = vor.u32 %v2232_v45, %v1927_v49  ;;  %v2055_v53 = vld [vmem:[%s3210_s2 + $0x1f0] sm:$0xf]  ;;  %v1992_v36 = vor.u32 %v2248_v52, %v1991_v29  ;;  %v2240_v49 = vld [vmem:[%s3210_s2 + $0x134] sm:$0xf0] }
 0x10e   :  { %708 = vmatpush.bf16.msra.mxu1 %v1735_v54  ;;  %765 = vmatpush.bf16.msrb.mxu2 %v1739_v55  ;;  %v225_v58 = vpop.permute.xlu1 %224  ;;  %v247_v59 = vpop.permute.xlu0 %246  ;;  %v2264_v54 = vld [vmem:[%s3210_s2 + $0x1f4] sm:$0xf0]  ;;  %v1959_v48 = vld [vmem:[%s3210_s2 + $0x130] sm:$0xf] }
 0x10f   :  { %v228_v60 = vrot.slane %v225_v58, 4  ;;  %v249_v61 = vrot.slane %v247_v59, 4  ;;  %1279 = vmatpush.bf16.msrb.mxu3 %v1928_v51  ;;  %v2056_v55 = vor.u32 %v2264_v54, %v2055_v53  ;;  %v1960_v51 = vor.u32 %v2240_v49, %v1959_v48  ;;  %v2256_v29 = vld [vmem:[%s3210_s2 + $0x1b4] sm:$0xf0]  ;;  %v1823_v53 = vld [vmem:[%s3210_s2 + $0x20] sm:$0xf] }
 0x110   :  { %v2247_v48 = vld [vmem:[%s3210_s2 + $0x174] sm:$0xf]  ;;  %v1993_v49 = vld [vmem:[%s3210_s2 + $0x178] sm:$0xf0] }
 0x111   :  { %v250_v62 = vsel %vm45_vm0, %v248_v56, %v249_v61  ;;  %v230_v1 = vsel %vm45_vm0, %v228_v60, %v229_v57  ;;  %v1855_v56 = vld [vmem:[%s3210_s2 + $0x60] sm:$0xf]  ;;  %v2214_v57 = vld [vmem:[%s3210_s2 + $0x64] sm:$0xf0]  ;;  %1305 = vmatpush.bf16.msra.mxu0 %v2056_v55 }
 0x112   :  { %v251_v2 = vsel %vm69_vm1, %v245_v28, %v250_v62  ;;  %v231_v3 = vsel %vm47_vm7, %v225_v58, %v230_v1  ;;  %v1726_v63 = vld [vmem:[#allocation2 + $0xa0] sm:$0xf]  ;;  %v2183_v13 = vld [vmem:[#allocation2 + $0xa4] sm:$0xf]  ;;  %v1856_v60 = vor.u32 %v2214_v57, %v1855_v56  ;;  %v2230_v61 = vld [vmem:[%s3210_s2 + $0xe4] sm:$0xf0] }
 0x113   :  { %253 = vst [vmem:[#allocation2 + $0xa8] sm:$0xff] %v251_v2  ;;  %v2157_v28 = vld [vmem:[%s3209_s1 + $0x4] sm:$0xf]  ;;  %v1919_v58 = vld [vmem:[%s3210_s2 + $0xe0] sm:$0xf] }
 0x114   :  { %233 = vst [vmem:[#allocation2 + $0x98] sm:$0xff] %v231_v3  ;;  %v1627_v38 = vor.u32 %v2157_v28, %v1624_v30  ;;  %v1920_v62 = vor.u32 %v2230_v61, %v1919_v58  ;;  %v1983_v1 = vld [vmem:[%s3210_s2 + $0x160] sm:$0xf]  ;;  %v2246_v2 = vld [vmem:[%s3210_s2 + $0x164] sm:$0xf0] }
 0x115   :  { %v2047_v3 = vld [vmem:[%s3210_s2 + $0x1e0] sm:$0xf]  ;;  %v2222_v56 = vld [vmem:[%s3210_s2 + $0xa4] sm:$0xf0] }
 0x116   :  { %v199_v4 = vpop.permute.xlu1 %198  ;;  %v197_v5 = vpop.permute.xlu0 %196  ;;  %1280 = vmatpush.bf16.msrb.mxu3 %v1920_v62  ;;  %v1887_v55 = vld [vmem:[%s3210_s2 + $0xa0] sm:$0xf] }
 0x117   :  { %v201_v6 = vrot.slane %v199_v4, 4  ;;  %v200_v8 = vrot.slane %v197_v5, 4  ;;  %v1984_v4 = vor.u32 %v2246_v2, %v1983_v1  ;;  %v1888_v57 = vor.u32 %v2222_v56, %v1887_v55  ;;  %v1951_v58 = vld [vmem:[%s3210_s2 + $0x120] sm:$0xf]  ;;  %v2254_v2 = vld [vmem:[%s3210_s2 + $0x1a4] sm:$0xf0] }
 0x118   :  { %1798 = vmatmul.msk.bf16.vlgmr.msrb.gmra.mxu0 %vm678_vm14, %v2599_v37  ;;  %v2015_v61 = vld [vmem:[%s3210_s2 + $0x1a0] sm:$0xf]  ;;  %v1857_v55 = vld [vmem:[%s3210_s2 + $0x68] sm:$0xf0]  ;;  %v2229_v56 = vld [vmem:[%s3210_s2 + $0xe4] sm:$0xf] }
 0x119   :  { %v202_v9 = vsel %vm45_vm0, %v200_v8, %v201_v6  ;;  %v1847_v8 = vld [vmem:[%s3210_s2 + $0x50] sm:$0xf] }
 0x11a   :  { %v203_v11 = vsel %vm113_vm13, %v197_v5, %v202_v9  ;;  %v2184_v12 = vld [vmem:[#allocation2 + $0xa4] sm:$0xf0]  ;;  %v1728_v14 = vld [vmem:[#allocation2 + $0xa8] sm:$0xf0]  ;;  %v2212_v9 = vld [vmem:[%s3210_s2 + $0x54] sm:$0xf0] }
 0x11b   :  { %205 = vst [vmem:[#allocation2 + $0x80] sm:$0xff] %v203_v11  ;;  %v1727_v18 = vor.u32 %v2184_v12, %v1726_v63  ;;  %v1731_v19 = vor.u32 %v2183_v13, %v1728_v14  ;;  %v2182_v20 = vld [vmem:[#allocation2 + $0x94] sm:$0xf0]  ;;  %v1720_v21 = vld [vmem:[#allocation2 + $0x98] sm:$0xf0] }
 0x11c   :  { %v1719_v37 = vor.u32 %v2182_v20, %v1718_v10  ;;  %v1723_v23 = vor.u32 %v2181_v7, %v1720_v21  ;;  %v2262_v5 = vld [vmem:[%s3210_s2 + $0x1e4] sm:$0xf0]  ;;  %v1911_v63 = vld [vmem:[%s3210_s2 + $0xd0] sm:$0xf]  ;;  %v1848_v7 = vor.u32 %v2212_v9, %v1847_v8  ;;  %v2228_v11 = vld [vmem:[%s3210_s2 + $0xd4] sm:$0xf0] }
 0x11d   :  { %709 = vmatpush.bf16.msra.mxu1 %v1727_v18  ;;  %766 = vmatpush.bf16.msrb.mxu2 %v1731_v19  ;;  %v2048_v6 = vor.u32 %v2262_v5, %v2047_v3  ;;  %v1912_v12 = vor.u32 %v2228_v11, %v1911_v63  ;;  %v1975_v13 = vld [vmem:[%s3210_s2 + $0x150] sm:$0xf]  ;;  %v2244_v14 = vld [vmem:[%s3210_s2 + $0x154] sm:$0xf0]  ;;  %v1839_v21 = vld [vmem:[%s3210_s2 + $0x40] sm:$0xf]  ;;  %v2016_v3 = vor.u32 %v2254_v2, %v2015_v61 }
 0x11e   :  { %v209_v0 = vpop.permute.xlu0 %208  ;;  %v1976_v18 = vor.u32 %v2244_v14, %v1975_v13  ;;  %v2260_v19 = vld [vmem:[%s3210_s2 + $0x1d4] sm:$0xf0]  ;;  %v1879_v9 = vld [vmem:[%s3210_s2 + $0x90] sm:$0xf]  ;;  %v2245_v61 = vld [vmem:[%s3210_s2 + $0x164] sm:$0xf] }
 0x11f   :  { %v211_v24 = vrot.slane %v209_v0, 4  ;;  %1306 = vmatpush.bf16.msra.mxu0 %v2048_v6  ;;  %1281 = vmatpush.bf16.msrb.mxu3 %v1912_v12  ;;  %v2226_v0 = vld [vmem:[%s3210_s2 + $0xc4] sm:$0xf0]  ;;  %v2204_v5 = vld [vmem:[%s3210_s2 + $0x14] sm:$0xf0] }
 0x120   :  { %v2220_v63 = vld [vmem:[%s3210_s2 + $0x94] sm:$0xf0]  ;;  %v1943_v11 = vld [vmem:[%s3210_s2 + $0x110] sm:$0xf]  ;;  %v2261_v2 = vld [vmem:[%s3210_s2 + $0x1e4] sm:$0xf] }
 0x121   :  { %v212_v25 = vsel %vm45_vm0, %v210_v22, %v211_v24  ;;  %710 = vmatpush.bf16.msra.mxu1 %v1719_v37  ;;  %767 = vmatpush.bf16.msrb.mxu2 %v1723_v23  ;;  %v2210_v22 = vld [vmem:[%s3210_s2 + $0x44] sm:$0xf0]  ;;  %v1903_v37 = vld [vmem:[%s3210_s2 + $0xc0] sm:$0xf]  ;;  %v2236_v12 = vld [vmem:[%s3210_s2 + $0x114] sm:$0xf0] }
 0x122   :  { %v213_v26 = vsel %vm124_vm11, %v207_v15, %v212_v25  ;;  %v1710_v27 = vld [vmem:[#allocation2 + $0x80] sm:$0xf]  ;;  %v2179_v32 = vld [vmem:[#allocation2 + $0x84] sm:$0xf]  ;;  %v2039_v15 = vld [vmem:[%s3210_s2 + $0x1d0] sm:$0xf]  ;;  %v1840_v23 = vor.u32 %v2210_v22, %v1839_v21  ;;  %v1904_v24 = vor.u32 %v2226_v0, %v1903_v37  ;;  %v1944_v14 = vor.u32 %v2236_v12, %v1943_v11 }
 0x123   :  { %215 = vst [vmem:[#allocation2 + $0x88] sm:$0xff] %v213_v26  ;;  %v2040_v20 = vor.u32 %v2260_v19, %v2039_v15  ;;  %v1967_v25 = vld [vmem:[%s3210_s2 + $0x140] sm:$0xf]  ;;  %v2242_v26 = vld [vmem:[%s3210_s2 + $0x144] sm:$0xf0]  ;;  %vm3112_vm0 = vmand %vm392_vm4, %vm402_vm12 }
 0x124   :  { %v1968_v30 = vor.u32 %v2242_v26, %v1967_v25  ;;  %1282 = vmatpush.bf16.msrb.mxu3 %v1904_v24  ;;  %v2007_v15 = vld [vmem:[%s3210_s2 + $0x190] sm:$0xf]  ;;  %v2202_v21 = vld [vmem:[%s3210_s2 + $0x4] sm:$0xf0]  ;;  %v2215_v24 = vld [vmem:[%s3210_s2 + $0x74] sm:$0xf] }
 0x125   :  { %1307 = vmatpush.bf16.msra.mxu0 %v2040_v20  ;;  %v1807_v20 = vld [vmem:[%s3210_s2] sm:$0xf]  ;;  %v2218_v0 = vld [vmem:[%s3210_s2 + $0x84] sm:$0xf0]  ;;  %v1865_v26 = vld [vmem:[%s3210_s2 + $0x78] sm:$0xf0] }
 0x126   :  { %v1808_v37 = vor.u32 %v2202_v21, %v1807_v20  ;;  %v2227_v11 = vld [vmem:[%s3210_s2 + $0xd4] sm:$0xf]  ;;  %v1913_v12 = vld [vmem:[%s3210_s2 + $0xd8] sm:$0xf0] }
 0x127   :  { %v2259_v20 = vld [vmem:[%s3210_s2 + $0x1d4] sm:$0xf]  ;;  %v2041_v21 = vld [vmem:[%s3210_s2 + $0x1d8] sm:$0xf0] }
 0x128   :  { %1799 = vmatmul.msk.bf16.gmra.mxu0 %vm678_vm14, %v2625_v16  ;;  %v2160_v16 = vld [vmem:[%s3209_s1 + $0x1c] sm:$0xf] }
 0x129   :  { %v1639_v40 = vor.u32 %v2160_v16, %v1636_v39 }
 0x12a   :  { %v2180_v31 = vld [vmem:[#allocation2 + $0x84] sm:$0xf0]  ;;  %v1712_v33 = vld [vmem:[#allocation2 + $0x88] sm:$0xf0] }
 0x12b   :  { %v1711_v34 = vor.u32 %v2180_v31, %v1710_v27  ;;  %v1715_v35 = vor.u32 %v2179_v32, %v1712_v33  ;;  %v2031_v27 = vld [vmem:[%s3210_s2 + $0x1c0] sm:$0xf]  ;;  %v2258_v31 = vld [vmem:[%s3210_s2 + $0x1c4] sm:$0xf0]  ;;  %v1831_v33 = vld [vmem:[%s3210_s2 + $0x30] sm:$0xf] }
 0x12c   :  { %v2032_v32 = vor.u32 %v2258_v31, %v2031_v27  ;;  %v2231_v27 = vld [vmem:[%s3210_s2 + $0xf4] sm:$0xf] }
 0x12d   :  { %711 = vmatpush.bf16.msra.mxu1 %v1711_v34  ;;  %768 = vmatpush.bf16.msrb.mxu2 %v1715_v35  ;;  %v2208_v34 = vld [vmem:[%s3210_s2 + $0x34] sm:$0xf0]  ;;  %v1895_v35 = vld [vmem:[%s3210_s2 + $0xb0] sm:$0xf] }
 0x12e   :  { %v1832_v39 = vor.u32 %v2208_v34, %v1831_v33  ;;  %1308 = vmatpush.bf16.msra.mxu0 %v2032_v32  ;;  %v1868_v32 = vor.u32 %v2215_v24, %v1865_v26  ;;  %v1935_v34 = vld [vmem:[%s3210_s2 + $0x100] sm:$0xf]  ;;  %v1841_v24 = vld [vmem:[%s3210_s2 + $0x48] sm:$0xf0] }
 0x130   :  { %712 = vmatmul.bf16.vlgmr.msra.gmra.mxu1 %v1627_v38  ;;  %769 = vmatmul.bf16.vlgmr.msrb.gmra.mxu2 %v1627_v38 }
 0x131   :  { %1266 = vmatpush.bf16.msrb.mxu1 %v1864_v50  ;;  %1292 = vmatpush.bf16.msra.mxu2 %v1992_v36  ;;  %v2023_v50 = vld [vmem:[%s3210_s2 + $0x1b0] sm:$0xf]  ;;  %v2206_v36 = vld [vmem:[%s3210_s2 + $0x24] sm:$0xf0] }
 0x132   :  { %v2024_v52 = vor.u32 %v2256_v29, %v2023_v50  ;;  %v1824_v54 = vor.u32 %v2206_v36, %v1823_v53  ;;  %v1996_v29 = vor.u32 %v2247_v48, %v1993_v49  ;;  %v2057_v53 = vld [vmem:[%s3210_s2 + $0x1f8] sm:$0xf0]  ;;  %v2213_v36 = vld [vmem:[%s3210_s2 + $0x64] sm:$0xf] }
 0x134   :  { %1309 = vmatpush.bf16.msra.mxu0 %v2024_v52  ;;  %v2263_v52 = vld [vmem:[%s3210_s2 + $0x1f4] sm:$0xf] }
 0x135   :  { %1267 = vmatpush.bf16.msrb.mxu1 %v1856_v60  ;;  %1293 = vmatpush.bf16.msra.mxu2 %v1984_v4  ;;  %v2238_v60 = vld [vmem:[%s3210_s2 + $0x124] sm:$0xf0]  ;;  %v1815_v4 = vld [vmem:[%s3210_s2 + $0x10] sm:$0xf] }
 0x136   :  { %v1952_v1 = vor.u32 %v2238_v60, %v1951_v58  ;;  %v1816_v8 = vor.u32 %v2204_v5, %v1815_v4  ;;  %v1860_v58 = vor.u32 %v2213_v36, %v1857_v55  ;;  %v2049_v4 = vld [vmem:[%s3210_s2 + $0x1e8] sm:$0xf0]  ;;  %v2211_v5 = vld [vmem:[%s3210_s2 + $0x54] sm:$0xf]  ;;  %v1961_v55 = vld [vmem:[%s3210_s2 + $0x138] sm:$0xf0] }
 0x138   :  { %1310 = vmatpush.bf16.msra.mxu0 %v2016_v3 }
 0x139   :  { %1268 = vmatpush.bf16.msrb.mxu1 %v1848_v7  ;;  %1294 = vmatpush.bf16.msra.mxu2 %v1976_v18  ;;  %v1880_v7 = vor.u32 %v2220_v63, %v1879_v9  ;;  %v2252_v18 = vld [vmem:[%s3210_s2 + $0x194] sm:$0xf0]  ;;  %v2052_v63 = vor.u32 %v2261_v2, %v2049_v4  ;;  %v2205_v2 = vld [vmem:[%s3210_s2 + $0x24] sm:$0xf] }
 0x13a   :  { %v2008_v19 = vor.u32 %v2252_v18, %v2007_v15  ;;  %v1916_v18 = vor.u32 %v2227_v11, %v1913_v12  ;;  %v2237_v11 = vld [vmem:[%s3210_s2 + $0x124] sm:$0xf] }
 0x13c   :  { %1311 = vmatpush.bf16.msra.mxu0 %v2008_v19  ;;  %v1977_v19 = vld [vmem:[%s3210_s2 + $0x158] sm:$0xf0] }
 0x13d   :  { %1269 = vmatpush.bf16.msrb.mxu1 %v1840_v23  ;;  %1295 = vmatpush.bf16.msra.mxu2 %v1968_v30  ;;  %v1871_v23 = vld [vmem:[%s3210_s2 + $0x80] sm:$0xf]  ;;  %v1929_v30 = vld [vmem:[%s3210_s2 + $0xf8] sm:$0xf0] }
 0x13e   :  { %v1872_v25 = vor.u32 %v2218_v0, %v1871_v23  ;;  %v1932_v33 = vor.u32 %v2231_v27, %v1929_v30  ;;  %v2241_v27 = vld [vmem:[%s3210_s2 + $0x144] sm:$0xf]  ;;  %v1969_v30 = vld [vmem:[%s3210_s2 + $0x148] sm:$0xf0] }
 0x13f   :  { %v1972_v48 = vor.u32 %v2241_v27, %v1969_v30  ;;  %v2235_v27 = vld [vmem:[%s3210_s2 + $0x114] sm:$0xf]  ;;  %v832_v30 = vld [vmem:[#allocation3 + $0xc] sm:$0x1] }
 0x140   :  { %717 = vmatmul.bf16.gmra.mxu1 %v1639_v40  ;;  %774 = vmatmul.bf16.gmra.mxu2 %v1639_v40  ;;  %v2224_v40 = vld [vmem:[%s3210_s2 + $0xb4] sm:$0xf0] }
 0x141   :  { %v1896_v42 = vor.u32 %v2224_v40, %v1895_v35  ;;  %1270 = vmatpush.bf16.msrb.mxu1 %v1832_v39  ;;  %1296 = vmatpush.bf16.msra.mxu2 %v1960_v51  ;;  %v2234_v35 = vld [vmem:[%s3210_s2 + $0x104] sm:$0xf0]  ;;  %v1999_v39 = vld [vmem:[%s3210_s2 + $0x180] sm:$0xf] }
 0x142   :  { %v1936_v40 = vor.u32 %v2234_v35, %v1935_v34  ;;  %v2033_v35 = vld [vmem:[%s3210_s2 + $0x1c8] sm:$0xf0] }
 0x143   :  { %1283 = vmatpush.bf16.msrb.mxu3 %v1896_v42  ;;  %v2250_v42 = vld [vmem:[%s3210_s2 + $0x184] sm:$0xf0] }
 0x144   :  { %v2000_v51 = vor.u32 %v2250_v42, %v1999_v39 }
 0x145   :  { %1271 = vmatpush.bf16.msrb.mxu1 %v1824_v54  ;;  %1297 = vmatpush.bf16.msra.mxu2 %v1952_v1  ;;  %v2060_v54 = vor.u32 %v2263_v52, %v2057_v53  ;;  %v1985_v1 = vld [vmem:[%s3210_s2 + $0x168] sm:$0xf0] }
 0x146   :  { %1312 = vmatpush.bf16.msra.mxu0 %v2000_v51  ;;  %v1988_v3 = vor.u32 %v2245_v61, %v1985_v1  ;;  %v2025_v1 = vld [vmem:[%s3210_s2 + $0x1b8] sm:$0xf0] }
 0x147   :  { %1284 = vmatpush.bf16.msrb.mxu3 %v1888_v57  ;;  %v1921_v57 = vld [vmem:[%s3210_s2 + $0xe8] sm:$0xf0] }
 0x148   :  { %v1924_v60 = vor.u32 %v2229_v56, %v1921_v57  ;;  %v2255_v56 = vld [vmem:[%s3210_s2 + $0x1b4] sm:$0xf] }
 0x149   :  { %1272 = vmatpush.bf16.msrb.mxu1 %v1816_v8  ;;  %1298 = vmatpush.bf16.msra.mxu2 %v1944_v14  ;;  %v1849_v8 = vld [vmem:[%s3210_s2 + $0x58] sm:$0xf0]  ;;  %v2243_v14 = vld [vmem:[%s3210_s2 + $0x154] sm:$0xf] }
 0x14a   :  { %1357 = vmatpush.bf16.msrb.mxu0 %v2060_v54  ;;  %v2239_v54 = vld [vmem:[%s3210_s2 + $0x134] sm:$0xf] }
 0x14b   :  { %1285 = vmatpush.bf16.msrb.mxu3 %v1880_v7  ;;  %v1852_v7 = vor.u32 %v2211_v5, %v1849_v8  ;;  %v1964_v61 = vor.u32 %v2239_v54, %v1961_v55  ;;  %v810_v5 = vld [vmem:[#allocation3] sm:$0x1]  ;;  %v2028_v8 = vor.u32 %v2255_v56, %v2025_v1 }
 0x14d   :  { %1273 = vmatpush.bf16.msrb.mxu1 %v1808_v37  ;;  %1299 = vmatpush.bf16.msra.mxu2 %v1936_v40 }
 0x14e   :  { %1358 = vmatpush.bf16.msrb.mxu0 %v2052_v63  ;;  %v2221_v63 = vld [vmem:[%s3210_s2 + $0xa4] sm:$0xf] }
 0x14f   :  { %1286 = vmatpush.bf16.msrb.mxu3 %v1872_v25  ;;  %v2225_v25 = vld [vmem:[%s3210_s2 + $0xc4] sm:$0xf] }
 0x151   :  { %1318 = vmatpush.bf16.msra.mxu1 %v1868_v32  ;;  %1344 = vmatpush.bf16.msrb.mxu2 %v1996_v29 }
 0x153   :  { %1331 = vmatpush.bf16.msra.mxu3 %v1932_v33 }
 0x154   :  { %v2669_v43 = vpop.f32.mrf.mxu2 }
 0x155   :  { %1319 = vmatpush.bf16.msra.mxu1 %v1860_v58  ;;  %1345 = vmatpush.bf16.msrb.mxu2 %v1988_v3  ;;  %v1825_v3 = vld [vmem:[%s3210_s2 + $0x28] sm:$0xf0] }
 0x157   :  { %1332 = vmatpush.bf16.msra.mxu3 %v1924_v60 }
 0x159   :  { %1320 = vmatpush.bf16.msra.mxu1 %v1852_v7  ;;  %v1889_v7 = vld [vmem:[%s3210_s2 + $0xa8] sm:$0xf0] }
 0x15b   :  { %1333 = vmatpush.bf16.msra.mxu3 %v1916_v18  ;;  %v1953_v18 = vld [vmem:[%s3210_s2 + $0x128] sm:$0xf0] }
 0x15c   :  { %v2673_v46 = vpop.f32.mrf.mxu2 }
 0x169   :  { %v2710_v59 = vpop.f32.mrf.mxu2 }
 0x171   :  { %v2774_v28 = vpop.f32.mrf.mxu2 }
 0x175   :  { %v2667_v17 = vpop.f32.mrf.mxu0 }
 0x17b   :  { %v2790_v16 = vpop.f32.mrf.mxu3 }
 0x17d   :  { %v2671_v44 = vpop.f32.mrf.mxu0 }
 0x183   :  { %v2855_v13 = vpop.f32.mrf.mxu3 }
 0x185   :  { %v2675_v47 = vpop.f32.mrf.mxu0 }
 0x18b   :  { %v756_v9 = vpop.f32.mrf.mxu3 }
 0x18d   :  { %v2736_v10 = vpop.f32.mrf.mxu0 }
 0x195   :  { %v2804_v45 = vpop.f32.mrf.mxu0 }
 0x19d   :  { %v2869_v22 = vpop.f32.mrf.mxu0 }
 0x1a5   :  { %v2967_v23 = vpop.f32.mrf.mxu0 }
 0x1ad   :  { %v2788_v38 = vpop.f32.mrf.mxu1 }
 0x1ae   :  { %v714_v37 = vadd.f32 %v2788_v38, %v2667_v17  ;;  %v2044_v17 = vor.u32 %v2259_v20, %v2041_v21  ;;  %v1905_v38 = vld [vmem:[%s3210_s2 + $0xc8] sm:$0xf0]  ;;  %v819_v20 = vld [vmem:[#allocation3 + $0x4] sm:$0x1]  ;;  %v826_v21 = vld [vmem:[#allocation3 + $0x8] sm:$0x1] }
 0x1af   :  { %v1908_v34 = vor.u32 %v2225_v25, %v1905_v38  ;;  %v1881_v38 = vld [vmem:[%s3210_s2 + $0x98] sm:$0xf0] }
 0x1b0   :  { %v733_v42 = vadd.f32 %v2669_v43, %v714_v37  ;;  %1359 = vmatpush.bf16.msrb.mxu0 %v2044_v17  ;;  %v2207_v43 = vld [vmem:[%s3210_s2 + $0x34] sm:$0xf]  ;;  %v1956_v37 = vor.u32 %v2237_v11, %v1953_v18 }
 0x1b1   :  { %1334 = vmatpush.bf16.msra.mxu3 %v1908_v34  ;;  %v2219_v17 = vld [vmem:[%s3210_s2 + $0x94] sm:$0xf]  ;;  %v1945_v34 = vld [vmem:[%s3210_s2 + $0x118] sm:$0xf0] }
 0x1b3   :  { %v2830_v62 = vpop.f32.mrf.mxu2 }
 0x1b4   :  { %v771_v52 = vadd.f32 %v2830_v62, %v2790_v16  ;;  %v1897_v16 = vld [vmem:[%s3210_s2 + $0xb8] sm:$0xf0]  ;;  %v758_v62 = vpop.f32.mrf.mxu3 }
 0x1b5   :  { %v2841_v6 = vpop.f32.mrf.mxu1 }
 0x1b6   :  { %v716_v15 = vadd.f32 %v2841_v6, %v2671_v44  ;;  %v1980_v44 = vor.u32 %v2243_v14, %v1977_v19  ;;  %v2209_v6 = vld [vmem:[%s3210_s2 + $0x44] sm:$0xf]  ;;  %v790_v4 = vadd.f32 %v2804_v45, %v771_v52 }
 0x1b7   :  { %v1844_v33 = vor.u32 %v2209_v6, %v1841_v24  ;;  %v2253_v19 = vld [vmem:[%s3210_s2 + $0x1a4] sm:$0xf] }
 0x1b8   :  { %v735_v39 = vadd.f32 %v2673_v46, %v716_v15  ;;  %1346 = vmatpush.bf16.msrb.mxu2 %v1980_v44  ;;  %v1833_v46 = vld [vmem:[%s3210_s2 + $0x38] sm:$0xf0]  ;;  %v1892_v15 = vor.u32 %v2221_v63, %v1889_v7  ;;  %v2217_v52 = vld [vmem:[%s3210_s2 + $0x84] sm:$0xf] }
 0x1b9   :  { %1321 = vmatpush.bf16.msra.mxu1 %v1844_v33  ;;  %v1817_v44 = vld [vmem:[%s3210_s2 + $0x18] sm:$0xf0]  ;;  %v1884_v33 = vor.u32 %v2219_v17, %v1881_v38  ;;  %v2278_v17 = vld [vmem:[%s3211_s4 + $0x68] sm:$0xff]  ;;  %v2265_v38 = vld [vmem:[%s3211_s4] sm:$0xff] }
 0x1bb   :  { %v2889_v31 = vpop.f32.mrf.mxu2 }
 0x1bc   :  { %v773_v49 = vadd.f32 %v2889_v31, %v2855_v13  ;;  %v1836_v31 = vor.u32 %v2207_v43, %v1833_v46  ;;  %1347 = vmatpush.bf16.msrb.mxu2 %v1972_v48  ;;  %v1873_v43 = vld [vmem:[%s3210_s2 + $0x88] sm:$0xf0] }
 0x1bd   :  { %v718_v50 = vpop.f32.mrf.mxu1 }
 0x1be   :  { %v719_v26 = vadd.f32 %v718_v50, %v2675_v47  ;;  %v2257_v47 = vld [vmem:[%s3210_s2 + $0x1c4] sm:$0xf]  ;;  %v792_v57 = vadd.f32 %v2869_v22, %v773_v49  ;;  %v796_v22 = vpop.f32.mrf.mxu0  ;;  %1322 = vmatpush.bf16.msra.mxu1 %v1836_v31  ;;  %v1937_v31 = vld [vmem:[%s3210_s2 + $0x108] sm:$0xf0] }
 0x1bf   :  { %v2036_v29 = vor.u32 %v2257_v47, %v2033_v35  ;;  %v2251_v47 = vld [vmem:[%s3210_s2 + $0x194] sm:$0xf]  ;;  %v2009_v35 = vld [vmem:[%s3210_s2 + $0x198] sm:$0xf0]  ;;  %v2201_v49 = vld [vmem:[%s3210_s2 + $0x4] sm:$0xf] }
 0x1c0   :  { %v738_v50 = vadd.f32 %v2710_v59, %v719_v26  ;;  %v2223_v59 = vld [vmem:[%s3210_s2 + $0xb4] sm:$0xf]  ;;  %1348 = vmatpush.bf16.msrb.mxu2 %v1964_v61  ;;  %v800_v6 = vmax.f32 %v790_v4, %v792_v57 }
 0x1c1   :  { %v1900_v36 = vor.u32 %v2223_v59, %v1897_v16  ;;  %1360 = vmatpush.bf16.msrb.mxu0 %v2036_v29  ;;  %v2012_v29 = vor.u32 %v2251_v47, %v2009_v35  ;;  %v926_v47 = vld [vmem:[%s3213_s3] sm:$0x3] }
 0x1c3   :  { %v775_v0 = vpop.f32.mrf.mxu2  ;;  %1335 = vmatpush.bf16.msra.mxu3 %v1900_v36  ;;  %v2001_v36 = vld [vmem:[%s3210_s2 + $0x188] sm:$0xf0] }
 0x1c4   :  { %1349 = vmatpush.bf16.msrb.mxu2 %v1956_v37  ;;  %v2271_v37 = vld [vmem:[%s3211_s4 + $0x30] sm:$0xff] }
 0x1c5   :  { %v720_v32 = vpop.f32.mrf.mxu1  ;;  %1361 = vmatpush.bf16.msrb.mxu0 %v2028_v8 }
 0x1c6   :  { %v721_v40 = vadd.f32 %v720_v32, %v2736_v10  ;;  %v799_v10 = vmax.f32 %v733_v42, %v735_v39 }
 0x1c7   :  { %1336 = vmatpush.bf16.msra.mxu3 %v1892_v15 }
 0x1c8   :  { %v740_v51 = vadd.f32 %v2774_v28, %v721_v40  ;;  %v776_v28 = vadd.f32 %v775_v0, %v756_v9  ;;  %v1828_v9 = vor.u32 %v2205_v2, %v1825_v3  ;;  %v2017_v0 = vld [vmem:[%s3210_s2 + $0x1a8] sm:$0xf0] }
 0x1c9   :  { %v2020_v26 = vor.u32 %v2253_v19, %v2017_v0  ;;  %v2270_v0 = vld [vmem:[%s3211_s4 + $0x28] sm:$0xff] }
 0x1ca   :  { %v801_v13 = vmax.f32 %v738_v50, %v740_v51  ;;  %v795_v45 = vadd.f32 %v2967_v23, %v776_v28  ;;  %v2203_v23 = vld [vmem:[%s3210_s2 + $0x14] sm:$0xf]  ;;  %1323 = vmatpush.bf16.msra.mxu1 %v1828_v9  ;;  %v1809_v50 = vld [vmem:[%s3210_s2 + $0x8] sm:$0xf0]  ;;  %v1948_v51 = vor.u32 %v2235_v27, %v1945_v34  ;;  %v2277_v27 = vld [vmem:[%s3211_s4 + $0x60] sm:$0xff] }
 0x1cb   :  { %v777_v53 = vpop.f32.mrf.mxu2  ;;  %v1820_v32 = vor.u32 %v2203_v23, %v1817_v44  ;;  %1362 = vmatpush.bf16.msrb.mxu0 %v2020_v26  ;;  %1337 = vmatpush.bf16.msra.mxu3 %v1884_v33  ;;  %v1812_v16 = vor.u32 %v2201_v49, %v1809_v50  ;;  %v2269_v23 = vld [vmem:[%s3211_s4 + $0x20] sm:$0xff]  ;;  %v2268_v44 = vld [vmem:[%s3211_s4 + $0x18] sm:$0xff]  ;;  %v2266_v26 = vld [vmem:[%s3211_s4 + $0x8] sm:$0xff] }
 0x1cc   :  { %v803_v58 = vmax.f32 %v799_v10, %v801_v13  ;;  %v778_v60 = vadd.f32 %v777_v53, %v758_v62  ;;  %v2233_v13 = vld [vmem:[%s3210_s2 + $0x104] sm:$0xf]  ;;  %v1876_v62 = vor.u32 %v2217_v52, %v1873_v43  ;;  %1350 = vmatpush.bf16.msrb.mxu2 %v1948_v51  ;;  %v2274_v33 = vld [vmem:[%s3211_s4 + $0x48] sm:$0xff] }
 0x1cd   :  { %v2249_v53 = vld [vmem:[%s3210_s2 + $0x184] sm:$0xf]  ;;  %v1940_v56 = vor.u32 %v2233_v13, %v1937_v31 }
 0x1ce   :  { %v805_v12 = vmax.f32 %v803_v58, 0.0  ;;  %v797_v14 = vadd.f32 %v796_v22, %v778_v60  ;;  %1324 = vmatpush.bf16.msra.mxu1 %v1820_v32  ;;  %v2004_v60 = vor.u32 %v2249_v53, %v2001_v36  ;;  %v2275_v32 = vld [vmem:[%s3211_s4 + $0x50] sm:$0xff]  ;;  %v2273_v34 = vld [vmem:[%s3211_s4 + $0x40] sm:$0xff] }
 0x1cf   :  { %1363 = vmatpush.bf16.msrb.mxu0 %v2012_v29  ;;  %1338 = vmatpush.bf16.msra.mxu3 %v1876_v62 }
 0x1d0   :  { %v809_v24 = vpack.c.bf16 %v805_v12, %v805_v12  ;;  %v802_v25 = vmax.f32 %v795_v45, %v797_v14  ;;  %1351 = vmatpush.bf16.msrb.mxu2 %v1940_v56  ;;  %v2272_v12 = vld [vmem:[%s3211_s4 + $0x38] sm:$0xff] }
 0x1d2   :  { %v811_v39 = vsel %vm2494_vm8, %v809_v24, %v810_v5  ;;  %v814_v40 = vshrl.u32 %v809_v24, 16  ;;  %v1801_v42 = vrot.slane %v809_v24, 9  ;;  %v804_v48 = vmax.f32 %v800_v6, %v802_v25  ;;  %1325 = vmatpush.bf16.msra.mxu1 %v1812_v16  ;;  %v2280_v6 = vld [vmem:[%s3211_s4 + $0x78] sm:$0xff]  ;;  %v2267_v24 = vld [vmem:[%s3211_s4 + $0x10] sm:$0xff] }
 0x1d3   :  { %812 = vst [vmem:[#allocation3] sm:$0x1] %v811_v39  ;;  %1364 = vmatpush.bf16.msrb.mxu0 %v2004_v60  ;;  %v2279_v25 = vld [vmem:[%s3211_s4 + $0x70] sm:$0xff]  ;;  %v928_v39 = vperm.slane %v926_v47, 0  ;;  %v929_v16 = vperm.slane %v926_v47, 1 }
 0x1d4   :  { %v820_v46 = vsel %vm2494_vm8, %v814_v40, %v819_v20  ;;  %v827_v59 = vsel %vm2494_vm8, %v1801_v42, %v826_v21  ;;  %v1802_v10 = vrot.slane %v814_v40, 9  ;;  %v806_v28 = vmax.f32 %v804_v48, 0.0  ;;  %v2288_v40 = vld [vmem:[%s3214_s6 + $0x38] sm:$0xff] }
 0x1d5   :  { %821 = vst [vmem:[#allocation3 + $0x4] sm:$0x1] %v820_v46 }
 0x1d6   :  { %828 = vst [vmem:[#allocation3 + $0x8] sm:$0x1] %v827_v59  ;;  %v833_v54 = vsel %vm2494_vm8, %v1802_v10, %v832_v30  ;;  %v835_v55 = vpack.c.bf16 %v806_v28, %v806_v28  ;;  %v2276_v30 = vld [vmem:[%s3211_s4 + $0x58] sm:$0xff] }
 0x1d7   :  { %834 = vst [vmem:[#allocation3 + $0xc] sm:$0x1] %v833_v54 }
 0x1d8   :  { %v837_v57 = vshll.u32 %v835_v55, 16  ;;  %v1804_v5 = vrot.slane %v835_v55, 9 }
 0x1da   :  { %v841_v61 = vld [vmem:[#allocation3] sm:$0x1]  ;;  %v1803_v1 = vrot.slane %v837_v57, 9 }
 0x1db   :  { %v842_v41 = vsel %vm3112_vm0, %v837_v57, %v841_v61 }
 0x1dc   :  { %843 = vst [vmem:[#allocation3] sm:$0x1] %v842_v41  ;;  %v844_v2 = vld [vmem:[#allocation3 + $0x4] sm:$0x1] }
 0x1dd   :  { %v845_v3 = vsel %vm3112_vm0, %v835_v55, %v844_v2  ;;  %v850_v4 = vld [vmem:[#allocation3 + $0x8] sm:$0x1] }
 0x1de   :  { %846 = vst [vmem:[#allocation3 + $0x4] sm:$0x1] %v845_v3  ;;  %v851_v22 = vsel %vm3112_vm0, %v1803_v1, %v850_v4  ;;  %v857_v8 = vld [vmem:[#allocation3 + $0xc] sm:$0x1]  ;;  %v2287_v3 = vld [vmem:[%s3214_s6 + $0x30] sm:$0xff]  ;;  %v2286_v4 = vld [vmem:[%s3214_s6 + $0x28] sm:$0xff] }
 0x1df   :  { %852 = vst [vmem:[#allocation3 + $0x8] sm:$0x1] %v851_v22  ;;  %v858_v9 = vsel %vm3112_vm0, %v1804_v5, %v857_v8  ;;  %v2285_v5 = vld [vmem:[%s3214_s6 + $0x20] sm:$0xff]  ;;  %v2284_v22 = vld [vmem:[%s3214_s6 + $0x18] sm:$0xff]  ;;  %v2283_v8 = vld [vmem:[%s3214_s6 + $0x10] sm:$0xff] }
 0x1e0   :  { %859 = vst [vmem:[#allocation3 + $0xc] sm:$0x1] %v858_v9  ;;  %v2282_v9 = vld [vmem:[%s3214_s6 + $0x8] sm:$0xff] }
 0x1e5   :  { %v860_v63 = vld [vmem:[#allocation3] sm:$0xff] }
 0x1e6   :  { %v934_v7 = vunpack.c.l.b16 %v860_v63  ;;  %v935_v11 = vunpack.c.h.b16 %v860_v63  ;;  %v2281_v63 = vld [vmem:[%s3214_s6] sm:$0xff] }
 0x1e7   :  { %v861_v45 = vld [vmem:[#allocation3 + $0x8] sm:$0xff] }
 0x1e8   :  { %v938_v14 = vpack.c.b16 %v934_v7, %v934_v7  ;;  %v939_v15 = vpack.c.b16 %v935_v11, %v935_v11  ;;  %v936_v18 = vunpack.c.l.b16 %v861_v45  ;;  %v937_v19 = vunpack.c.h.b16 %v861_v45  ;;  %v2298_v45 = vld [vmem:[%s3212_s5] ss:$0 sm:$0xff] }
 0x1ea   :  { %1274 = vmatmul.bf16.vlgmr.msrb.gmra.mxu1 %v938_v14  ;;  %1287 = vmatmul.bf16.vlgmr.msrb.gmra.mxu3 %v939_v15  ;;  %v940_v20 = vpack.c.b16 %v936_v18, %v936_v18  ;;  %v941_v21 = vpack.c.b16 %v937_v19, %v937_v19 }
 0x1eb   :  { %1506 = vmatpush.bf16.msrb.mxu1 %v2272_v12  ;;  %1519 = vmatpush.bf16.msrb.mxu3 %v2280_v6 }
 0x1ec   :  { %1300 = vmatmul.bf16.vlgmr.msra.gmra.mxu2 %v940_v20  ;;  %1313 = vmatmul.bf16.vlgmr.msra.gmra.mxu0 %v941_v21 }
 0x1ed   :  { %1602 = vmatpush.bf16.msra.mxu2 %v2288_v40 }
 0x1ef   :  { %1507 = vmatpush.bf16.msrb.mxu1 %v2271_v37  ;;  %1520 = vmatpush.bf16.msrb.mxu3 %v2279_v25 }
 0x1f1   :  { %1603 = vmatpush.bf16.msra.mxu2 %v2287_v3 }
 0x1f3   :  { %1508 = vmatpush.bf16.msrb.mxu1 %v2270_v0  ;;  %1521 = vmatpush.bf16.msrb.mxu3 %v2278_v17 }
 0x1f5   :  { %1604 = vmatpush.bf16.msra.mxu2 %v2286_v4 }
 0x1f7   :  { %1509 = vmatpush.bf16.msrb.mxu1 %v2269_v23  ;;  %1522 = vmatpush.bf16.msrb.mxu3 %v2277_v27 }
 0x1f9   :  { %1605 = vmatpush.bf16.msra.mxu2 %v2285_v5 }
 0x1fa   :  { %1326 = vmatmul.bf16.vlgmr.msra.gmra.mxu1 %v938_v14  ;;  %1339 = vmatmul.bf16.vlgmr.msra.gmra.mxu3 %v939_v15 }
 0x1fb   :  { %1510 = vmatpush.bf16.msrb.mxu1 %v2268_v44  ;;  %1523 = vmatpush.bf16.msrb.mxu3 %v2276_v30 }
 0x1fc   :  { %1352 = vmatmul.bf16.vlgmr.msrb.gmra.mxu2 %v940_v20  ;;  %1365 = vmatmul.bf16.vlgmr.msrb.gmra.mxu0 %v941_v21  ;;  %v2299_v21 = vld [vmem:[%s3215_s7] ss:$0 sm:$0xff] }
 0x1fd   :  { %1606 = vmatpush.bf16.msra.mxu2 %v2284_v22 }
 0x1ff   :  { %1511 = vmatpush.bf16.msrb.mxu1 %v2267_v24  ;;  %1524 = vmatpush.bf16.msrb.mxu3 %v2275_v32 }
 0x201   :  { %1607 = vmatpush.bf16.msra.mxu2 %v2283_v8 }
 0x203   :  { %1512 = vmatpush.bf16.msrb.mxu1 %v2266_v26  ;;  %1525 = vmatpush.bf16.msrb.mxu3 %v2274_v33 }
 0x205   :  { %1608 = vmatpush.bf16.msra.mxu2 %v2282_v9 }
 0x207   :  { %1513 = vmatpush.bf16.msrb.mxu1 %v2265_v38  ;;  %1526 = vmatpush.bf16.msrb.mxu3 %v2273_v34 }
 0x209   :  { %1609 = vmatpush.bf16.msra.mxu2 %v2281_v63 }
 0x267   :  { %v1275_v35 = vpop.f32.mrf.mxu1 }
 0x268   :  { %v1276_v48 = vadd.f32 %v1275_v35, %v928_v39 }
 0x269   :  { %v1314_v42 = vpop.f32.mrf.mxu0 }
 0x26d   :  { %v1288_v49 = vpop.f32.mrf.mxu3 }
 0x26e   :  { %v1289_v50 = vadd.f32 %v1288_v49, %v1276_v48 }
 0x26f   :  { %v1277_v51 = vpop.f32.mrf.mxu1  ;;  %v1301_v29 = vpop.f32.mrf.mxu2 }
 0x270   :  { %v1302_v52 = vadd.f32 %v1301_v29, %v1289_v50 }
 0x271   :  { %v1316_v43 = vpop.f32.mrf.mxu0 }
 0x272   :  { %v1315_v46 = vadd.f32 %v1314_v42, %v1302_v52 }
 0x274   :  { %v1370_v59 = vmax.f32 %v1315_v46, 0.0 }
 0x275   :  { %v1290_v10 = vpop.f32.mrf.mxu3 }
 0x276   :  { %v1372_v28 = vpack.c.bf16 %v1370_v59, %v1370_v59 }
 0x277   :  { %v1303_v13 = vpop.f32.mrf.mxu2  ;;  %v1327_v31 = vpop.f32.mrf.mxu1 }
 0x278   :  { %1514 = vmatmul.bf16.vlgmr.msrb.gmra.mxu1 %v1372_v28  ;;  %v1328_v53 = vadd.f32 %v1327_v31, %v929_v16 }
 0x279   :  { %v1366_v62 = vpop.f32.mrf.mxu0 }
 0x27d   :  { %v1340_v36 = vpop.f32.mrf.mxu3 }
 0x27e   :  { %v1341_v54 = vadd.f32 %v1340_v36, %v1328_v53 }
 0x27f   :  { %v1329_v55 = vpop.f32.mrf.mxu1  ;;  %v1353_v56 = vpop.f32.mrf.mxu2 }
 0x280   :  { %v1354_v57 = vadd.f32 %v1353_v56, %v1341_v54 }
 0x281   :  { %v1368_v58 = vpop.f32.mrf.mxu0 }
 0x282   :  { %v1367_v60 = vadd.f32 %v1366_v62, %v1354_v57 }
 0x284   :  { %v1371_v61 = vmax.f32 %v1367_v60, 0.0 }
 0x285   :  { %v1342_v1 = vpop.f32.mrf.mxu3 }
 0x286   :  { %v1373_v41 = vpack.c.bf16 %v1371_v61, %v1371_v61 }
 0x287   :  { %v1355_v2 = vpop.f32.mrf.mxu2 }
 0x288   :  { %1527 = vmatmul.bf16.vlgmr.msrb.gmra.mxu3 %v1373_v41 }
 0x2f5   :  { %v1515_v7 = vpop.f32.mrf.mxu1 }
 0x2f6   :  { %v1516_v12 = vadd.f32 %v2298_v45, %v1515_v7 }
 0x2fd   :  { %v1517_v11 = vpop.f32.mrf.mxu1 }
 0x30b   :  { %v1528_v14 = vpop.f32.mrf.mxu3 }
 0x30c   :  { %v1529_v15 = vadd.f32 %v1528_v14, %v1516_v12 }
 0x30e   :  { %v1532_v18 = vmax.f32 %v1529_v15, 0.0 }
 0x310   :  { %v1533_v19 = vpack.c.bf16 %v1532_v18, %v1532_v18 }
 0x312   :  { %1610 = vmatmul.bf16.vlgmr.msra.gmra.mxu2 %v1533_v19 }
 0x313   :  { %v1530_v20 = vpop.f32.mrf.mxu3 }
 0x395   :  { %v1611_v37 = vpop.f32.mrf.mxu2 }
 0x396   :  { %v1612_v0 = vadd.f32 %v2299_v21, %v1611_v37 }
 0x398   :  { %1615 = vst [vmem:[%s3216_s8] sm:$0xff] %v1612_v0 }
 0x39d   :  { %v1613_v23 = vpop.f32.mrf.mxu2 }

</bundles_post_ra>
